<compile_context>
chip_gen: v5e
topology: v5e:2x2
jax: 0.10.0
libtpu: 0.0.40
codegen_flags: <defaults>
</compile_context>

<pallas_src>
import functools

import numpy as np
import jax
import jax.numpy as jnp
from jax import lax
from jax.experimental import pallas as pl
from jax.experimental.pallas import tpu as pltpu


def _round_up(x, m):
    return (x + m - 1) // m * m


def _layernorm_f32(y, gamma, beta, eps=1e-5):
    # LayerNorm math kept in f32 on purpose (v5e has no bf16 VPU/EUP).
    mu = jnp.mean(y, axis=-1, keepdims=True)
    var = jnp.mean(jnp.square(y - mu), axis=-1, keepdims=True)
    return (y - mu) * lax.rsqrt(var + eps) * gamma + beta


# ---------------------------------------------------------------------------
# Stage 1: key = LayerNorm(memory @ W2 + b2), computed ONCE (hoisted out of the
# per-row-block grid), emitted as a resident bf16 [n_pad, F] tensor.
# ---------------------------------------------------------------------------
def _key_kernel(mem_ref, w2_ref, p2_ref, k_ref):
    # p2_ref rows: 0 = b2, 1 = gamma2, 2 = beta2 (rest zero padding).
    y = jnp.dot(mem_ref[...], w2_ref[...], preferred_element_type=jnp.float32)
    y = y + p2_ref[0:1, :]
    k = _layernorm_f32(y, p2_ref[1:2, :], p2_ref[2:3, :])
    k_ref[...] = k.astype(k_ref.dtype)


# ---------------------------------------------------------------------------
# Stage 2: query-side Linear + LayerNorm + all-pairs scores for one
# (row-block, key-block) tile.  Both grid axes are independent ("parallel").
# ---------------------------------------------------------------------------
def _score_kernel(tgt_ref, w1_ref, p1_ref, key_ref, o_ref):
    # p1_ref rows: 0 = b1, 1 = gamma1 * num_layers, 2 = beta1 * num_layers.
    y = jnp.dot(tgt_ref[...], w1_ref[...], preferred_element_type=jnp.float32)
    y = y + p1_ref[0:1, :]
    q = _layernorm_f32(y, p1_ref[1:2, :], p1_ref[2:3, :])

    # bf16 operands for the dominant MXU matmul; accumulate in f32.
    q = q.astype(key_ref.dtype)
    s = lax.dot_general(q, key_ref[...],
                        dimension_numbers=(((1,), (1,)), ((), ())),
                        preferred_element_type=jnp.float32)
    o_ref[...] = s.astype(o_ref.dtype)


# ---------------------------------------------------------------------------
# Decoder wrapper (layout plumbing only; all compute is in the kernels above).
# ---------------------------------------------------------------------------
def transformer_decoder(tgt, memory, params, num_layers, *,
                        row_tile=256, col_tile=512,
                        out_dtype=jnp.bfloat16, key_dtype=jnp.bfloat16):
    q_len, h, w, d = tgt.shape
    k_len = memory.shape[0]
    s = h * w
    m, n = q_len * s, k_len * s
    f = params["w1"].shape[1]

    # ---- tiling: query rows (rt, mult of 8) x key columns (nk, mult of 128) -
    rt = min(row_tile, _round_up(m, 8))
    if m > 8 and _round_up(m, rt) // rt < 2:
        # Guarantee >=2 parallel row blocks so both v7x TensorCores get work.
        rt = max(8, _round_up((m + 1) // 2, 8))
    m_pad = _round_up(m, rt)

    nk = min(col_tile, _round_up(n, 128))
    n_pad = _round_up(n, nk)

    tgt2d = tgt.reshape(m, d).astype(jnp.float32)
    mem2d = memory.reshape(n, d).astype(jnp.float32)
    if m_pad != m:
        tgt2d = jnp.pad(tgt2d, ((0, m_pad - m), (0, 0)))
    if n_pad != n:
        mem2d = jnp.pad(mem2d, ((0, n_pad - n), (0, 0)))

    def _pack(vecs):
        # One (8, F) block per side instead of three padded (1, F) inputs.
        p = jnp.zeros((8, f), jnp.float32)
        for i, v in enumerate(vecs):
            p = p.at[i, :].set(v.astype(jnp.float32))
        return p

    # Shared-parameter layers summed => fold num_layers into the query-side LN
    # affine (gamma AND beta), a one-time (F,)-vector multiply at trace time.
    scale = float(num_layers)
    p1 = _pack([params["b1"], params["g1"] * scale, params["beta1"] * scale])
    p2 = _pack([params["b2"], params["g2"], params["beta2"]])
    w1 = params["w1"].astype(jnp.float32)
    w2 = params["w2"].astype(jnp.float32)

    # ---- stage 1: hoisted key-side Linear + LN (computed once) -------------
    key = pl.pallas_call(
        _key_kernel,
        out_shape=jax.ShapeDtypeStruct((n_pad, f), key_dtype),
        grid=(n_pad // nk,),
        in_specs=[pl.BlockSpec((nk, d), lambda i: (i, 0)),
                  pl.BlockSpec((d, f), lambda i: (0, 0)),
                  pl.BlockSpec((8, f), lambda i: (0, 0))],
        out_specs=pl.BlockSpec((nk, f), lambda i: (i, 0)),
        compiler_params=pltpu.CompilerParams(
            dimension_semantics=("parallel",)),
    )(mem2d, w2, p2)

    # ---- stage 2: scores, tiled over (row blocks, key blocks) --------------
    out_bytes = np.dtype(out_dtype).itemsize
    key_bytes = np.dtype(key_dtype).itemsize
    per_step = (2 * rt * d * 4                 # tgt tile, f32, double-buffered
                + 2 * nk * f * key_bytes       # key tile, double-buffered
                + 2 * rt * nk * out_bytes      # output tile, double-buffered
                + d * f * 4                    # W1 (constant block)
                + 8 * f * 4)                   # packed LN params
    vmem_limit = min(int(per_step * 1.3) + (8 << 20), 100 << 20)

    scores = pl.pallas_call(
        _score_kernel,
        out_shape=jax.ShapeDtypeStruct((m_pad, n_pad), out_dtype),
        grid=(m_pad // rt, n_pad // nk),
        in_specs=[pl.BlockSpec((rt, d), lambda i, j: (i, 0)),   # query rows
                  pl.BlockSpec((d, f), lambda i, j: (0, 0)),    # W1
                  pl.BlockSpec((8, f), lambda i, j: (0, 0)),    # b1/g1/beta1
                  pl.BlockSpec((nk, f), lambda i, j: (j, 0))],  # key block
        out_specs=pl.BlockSpec((rt, nk), lambda i, j: (i, j)),
        compiler_params=pltpu.CompilerParams(
            dimension_semantics=("parallel", "parallel"),
            vmem_limit_bytes=vmem_limit),
    )(tgt2d, w1, p1, key)

    # Lane-dense [q*s, k*s] slab -> reference [q, k, s, s] layout.
    scores = scores[:m, :n].reshape(q_len, s, k_len, s)
    return jnp.transpose(scores, (0, 2, 1, 3))


# ---------------------------------------------------------------------------
# Pure-JAX reference (correctness only).
# ---------------------------------------------------------------------------
def _reference(tgt, memory, params, num_layers):
    q_len, h, w, d = tgt.shape
    k_len = memory.shape[0]
    s = h * w
    hp = lax.Precision.HIGHEST

    def lin_ln(x2d, wn, bn, gn, ben):
        y = jnp.dot(x2d, params[wn], precision=hp) + params[bn]
        mu = jnp.mean(y, axis=-1, keepdims=True)
        var = jnp.mean(jnp.square(y - mu), axis=-1, keepdims=True)
        return (y - mu) / jnp.sqrt(var + 1e-5) * params[gn] + params[ben]

    q = lin_ln(tgt.reshape(q_len * s, d), "w1", "b1", "g1", "beta1")
    k = lin_ln(memory.reshape(k_len * s, d), "w2", "b2", "g2", "beta2")
    sc = jnp.dot(q, k.T, precision=hp).reshape(q_len, s, k_len, s)
    sc = jnp.transpose(sc, (0, 2, 1, 3))
    out = sc
    for _ in range(num_layers - 1):
        out = out + sc
    return out


# ---------------------------------------------------------------------------
if __name__ == "__main__":
    Q, K, H, W = 8, 8, 4, 4          # query len, memory len, feature-map size
    D, F = 128, 128                  # d_model, dim_feedforward (lane-aligned)
    NUM_LAYERS = 2

    key = jax.random.PRNGKey(0)
    k1, k2, k3, k4, k5, k6 = jax.random.split(key, 6)

    xav = (6.0 / (D + F)) ** 0.5      # xavier_uniform_ bound
    bnd = 1.0 / (D ** 0.5)            # PyTorch Linear default bias bound
    params = {
        "w1": jax.random.uniform(k1, (D, F), jnp.float32, -xav, xav),
        "b1": jax.random.uniform(k2, (F,), jnp.float32, -bnd, bnd),
        "g1": jnp.ones((F,), jnp.float32),
        "beta1": jnp.zeros((F,), jnp.float32),
        "w2": jax.random.uniform(k3, (D, F), jnp.float32, -xav, xav),
        "b2": jax.random.uniform(k4, (F,), jnp.float32, -bnd, bnd),
        "g2": jnp.ones((F,), jnp.float32),
        "beta2": jnp.zeros((F,), jnp.float32),
    }

    tgt = jax.random.normal(k5, (Q, H, W, D), jnp.float32)
    memory = jax.random.normal(k6, (K, H, W, D), jnp.float32)

    fn = jax.jit(functools.partial(transformer_decoder, num_layers=NUM_LAYERS))
    out = fn(tgt, memory, params)
    jax.block_until_ready(out)

    assert out.shape == (Q, K, H * W, H * W), out.shape

    # bf16 score matmul operands + bf16 output -> compare with a tolerance
    # normalized to the score scale (f32-HIGHEST reference).
    ref = _reference(tgt, memory, params, NUM_LAYERS)
    rel = float(jnp.max(jnp.abs(out.astype(jnp.float32) - ref))
                / (jnp.max(jnp.abs(ref)) + 1e-6))
    assert rel < 2e-2, rel

    print("KERNEL_OK")
</pallas_src>

<mosaic_0001>
module attributes {stable_mosaic.version = 11 : i64} {
  func.func @_key_kernel(%arg0: i32, %arg1: memref<128x128xf32, #tpu.memory_space<vmem>>, %arg2: memref<128x128xf32, #tpu.memory_space<vmem>>, %arg3: memref<8x128xf32, #tpu.memory_space<vmem>>, %arg4: memref<128x128xbf16, #tpu.memory_space<vmem>>) attributes {dimension_semantics = [#tpu.dimension_semantics<parallel>], iteration_bounds = array<i64: 1>, scalar_prefetch = 0 : i64, scratch_operands = 0 : i64, tpu.core_type = #tpu.core_type<tc>, window_params = [{transform_indices = @transform_0, window_bounds = array<i64: 128, 128>}, {pipeline_mode = #tpu.pipeline_mode<synchronous>, transform_indices = @transform_1, window_bounds = array<i64: 128, 128>}, {pipeline_mode = #tpu.pipeline_mode<synchronous>, transform_indices = @transform_2, window_bounds = array<i64: 8, 128>}, {transform_indices = @transform_3, window_bounds = array<i64: 128, 128>}]} {
    %c0 = arith.constant 0 : index
    %c0_0 = arith.constant 0 : index
    %0 = vector.load %arg1[%c0, %c0_0] : memref<128x128xf32, #tpu.memory_space<vmem>>, vector<128x128xf32>
    %c0_1 = arith.constant 0 : index
    %c0_2 = arith.constant 0 : index
    %1 = vector.load %arg2[%c0_1, %c0_2] : memref<128x128xf32, #tpu.memory_space<vmem>>, vector<128x128xf32>
    %cst = arith.constant dense<0.000000e+00> : vector<128x128xf32>
    %2 = tpu.matmul %0, %1, %cst {dimension_numbers = #tpu.dot_dimension_numbers<[1], [0], [0], [1], [0, 0, 1, 1], [], []>} : vector<128x128xf32>, vector<128x128xf32>, vector<128x128xf32> -> vector<128x128xf32>
    %c0_3 = arith.constant 0 : index
    %c0_4 = arith.constant 0 : index
    %3 = vector.load %arg3[%c0_3, %c0_4] : memref<8x128xf32, #tpu.memory_space<vmem>>, vector<1x128xf32>
    %4 = vector.broadcast %3 : vector<1x128xf32> to vector<128x128xf32>
    %5 = arith.addf %2, %4 : vector<128x128xf32>
    %c1 = arith.constant 1 : index
    %c0_5 = arith.constant 0 : index
    %6 = vector.load %arg3[%c1, %c0_5] : memref<8x128xf32, #tpu.memory_space<vmem>>, vector<1x128xf32>
    %c2 = arith.constant 2 : index
    %c0_6 = arith.constant 0 : index
    %7 = vector.load %arg3[%c2, %c0_6] : memref<8x128xf32, #tpu.memory_space<vmem>>, vector<1x128xf32>
    %cst_7 = arith.constant dense<0.000000e+00> : vector<128xf32>
    %8 = vector.multi_reduction <add>, %5, %cst_7 [1] : vector<128x128xf32> to vector<128xf32>
    %9 = vector.shape_cast %8 : vector<128xf32> to vector<128x1xf32>
    %cst_8 = arith.constant 1.280000e+02 : f32
    %10 = vector.broadcast %cst_8 : f32 to vector<128x1xf32>
    %11 = arith.divf %9, %10 : vector<128x1xf32>
    %12 = vector.broadcast %11 : vector<128x1xf32> to vector<128x128xf32>
    %13 = arith.subf %5, %12 : vector<128x128xf32>
    %14 = arith.mulf %13, %13 : vector<128x128xf32>
    %cst_9 = arith.constant dense<0.000000e+00> : vector<128xf32>
    %15 = vector.multi_reduction <add>, %14, %cst_9 [1] : vector<128x128xf32> to vector<128xf32>
    %16 = vector.shape_cast %15 : vector<128xf32> to vector<128x1xf32>
    %cst_10 = arith.constant 1.280000e+02 : f32
    %17 = vector.broadcast %cst_10 : f32 to vector<128x1xf32>
    %18 = arith.divf %16, %17 : vector<128x1xf32>
    %19 = vector.broadcast %11 : vector<128x1xf32> to vector<128x128xf32>
    %20 = arith.subf %5, %19 : vector<128x128xf32>
    %cst_11 = arith.constant 9.99999974E-6 : f32
    %21 = vector.broadcast %cst_11 : f32 to vector<128x1xf32>
    %22 = arith.addf %18, %21 : vector<128x1xf32>
    %23 = math.rsqrt %22 : vector<128x1xf32>
    %24 = vector.broadcast %23 : vector<128x1xf32> to vector<128x128xf32>
    %25 = arith.mulf %20, %24 : vector<128x128xf32>
    %26 = vector.broadcast %6 : vector<1x128xf32> to vector<128x128xf32>
    %27 = arith.mulf %25, %26 : vector<128x128xf32>
    %28 = vector.broadcast %7 : vector<1x128xf32> to vector<128x128xf32>
    %29 = arith.addf %27, %28 : vector<128x128xf32>
    %30 = arith.truncf %29 : vector<128x128xf32> to vector<128x128xbf16>
    %c0_12 = arith.constant 0 : index
    %c0_13 = arith.constant 0 : index
    %31 = vector.load %arg4[%c0_12, %c0_13] : memref<128x128xbf16, #tpu.memory_space<vmem>>, vector<128x128xbf16>
    tpu.vector_store %arg4[%c0_12, %c0_13], %30 {strides = array<i32>} : memref<128x128xbf16, #tpu.memory_space<vmem>>, vector<128x128xbf16>,
    return
  }
  func.func @transform_0(%arg0: i32) -> (i32, i32) {
    %c0_i32 = arith.constant 0 : i32
    %c0_i32_0 = arith.constant 0 : i32
    return %arg0, %c0_i32 : i32, i32
  }
  func.func @transform_1(%arg0: i32) -> (i32, i32) {
    %c0_i32 = arith.constant 0 : i32
    %c0_i32_0 = arith.constant 0 : i32
    %c0_i32_1 = arith.constant 0 : i32
    return %c0_i32, %c0_i32_0 : i32, i32
  }
  func.func @transform_2(%arg0: i32) -> (i32, i32) {
    %c0_i32 = arith.constant 0 : i32
    %c0_i32_0 = arith.constant 0 : i32
    %c0_i32_1 = arith.constant 0 : i32
    return %c0_i32, %c0_i32_0 : i32, i32
  }
  func.func @transform_3(%arg0: i32) -> (i32, i32) {
    %c0_i32 = arith.constant 0 : i32
    %c0_i32_0 = arith.constant 0 : i32
    return %arg0, %c0_i32 : i32, i32
  }
}

module attributes {stable_mosaic.version = 11 : i64} {
  func.func @_score_kernel(%arg0: i32, %arg1: i32, %arg2: memref<64x128xf32, #tpu.memory_space<vmem>>, %arg3: memref<128x128xf32, #tpu.memory_space<vmem>>, %arg4: memref<8x128xf32, #tpu.memory_space<vmem>>, %arg5: memref<128x128xbf16, #tpu.memory_space<vmem>>, %arg6: memref<64x128xbf16, #tpu.memory_space<vmem>>) attributes {dimension_semantics = [#tpu.dimension_semantics<parallel>, #tpu.dimension_semantics<parallel>], iteration_bounds = array<i64: 2, 1>, scalar_prefetch = 0 : i64, scratch_operands = 0 : i64, tpu.core_type = #tpu.core_type<tc>, window_params = [{transform_indices = @transform_0, window_bounds = array<i64: 64, 128>}, {pipeline_mode = #tpu.pipeline_mode<synchronous>, transform_indices = @transform_1, window_bounds = array<i64: 128, 128>}, {pipeline_mode = #tpu.pipeline_mode<synchronous>, transform_indices = @transform_2, window_bounds = array<i64: 8, 128>}, {transform_indices = @transform_3, window_bounds = array<i64: 128, 128>}, {transform_indices = @transform_4, window_bounds = array<i64: 64, 128>}]} {
    %c0 = arith.constant 0 : index
    %c0_0 = arith.constant 0 : index
    %0 = vector.load %arg2[%c0, %c0_0] : memref<64x128xf32, #tpu.memory_space<vmem>>, vector<64x128xf32>
    %c0_1 = arith.constant 0 : index
    %c0_2 = arith.constant 0 : index
    %1 = vector.load %arg3[%c0_1, %c0_2] : memref<128x128xf32, #tpu.memory_space<vmem>>, vector<128x128xf32>
    %cst = arith.constant dense<0.000000e+00> : vector<64x128xf32>
    %2 = tpu.matmul %0, %1, %cst {dimension_numbers = #tpu.dot_dimension_numbers<[1], [0], [0], [1], [0, 0, 1, 1], [], []>} : vector<64x128xf32>, vector<128x128xf32>, vector<64x128xf32> -> vector<64x128xf32>
    %c0_3 = arith.constant 0 : index
    %c0_4 = arith.constant 0 : index
    %3 = vector.load %arg4[%c0_3, %c0_4] : memref<8x128xf32, #tpu.memory_space<vmem>>, vector<1x128xf32>
    %4 = vector.broadcast %3 : vector<1x128xf32> to vector<64x128xf32>
    %5 = arith.addf %2, %4 : vector<64x128xf32>
    %c1 = arith.constant 1 : index
    %c0_5 = arith.constant 0 : index
    %6 = vector.load %arg4[%c1, %c0_5] : memref<8x128xf32, #tpu.memory_space<vmem>>, vector<1x128xf32>
    %c2 = arith.constant 2 : index
    %c0_6 = arith.constant 0 : index
    %7 = vector.load %arg4[%c2, %c0_6] : memref<8x128xf32, #tpu.memory_space<vmem>>, vector<1x128xf32>
    %cst_7 = arith.constant dense<0.000000e+00> : vector<64xf32>
    %8 = vector.multi_reduction <add>, %5, %cst_7 [1] : vector<64x128xf32> to vector<64xf32>
    %9 = vector.shape_cast %8 : vector<64xf32> to vector<64x1xf32>
    %cst_8 = arith.constant 1.280000e+02 : f32
    %10 = vector.broadcast %cst_8 : f32 to vector<64x1xf32>
    %11 = arith.divf %9, %10 : vector<64x1xf32>
    %12 = vector.broadcast %11 : vector<64x1xf32> to vector<64x128xf32>
    %13 = arith.subf %5, %12 : vector<64x128xf32>
    %14 = arith.mulf %13, %13 : vector<64x128xf32>
    %cst_9 = arith.constant dense<0.000000e+00> : vector<64xf32>
    %15 = vector.multi_reduction <add>, %14, %cst_9 [1] : vector<64x128xf32> to vector<64xf32>
    %16 = vector.shape_cast %15 : vector<64xf32> to vector<64x1xf32>
    %cst_10 = arith.constant 1.280000e+02 : f32
    %17 = vector.broadcast %cst_10 : f32 to vector<64x1xf32>
    %18 = arith.divf %16, %17 : vector<64x1xf32>
    %19 = vector.broadcast %11 : vector<64x1xf32> to vector<64x128xf32>
    %20 = arith.subf %5, %19 : vector<64x128xf32>
    %cst_11 = arith.constant 9.99999974E-6 : f32
    %21 = vector.broadcast %cst_11 : f32 to vector<64x1xf32>
    %22 = arith.addf %18, %21 : vector<64x1xf32>
    %23 = math.rsqrt %22 : vector<64x1xf32>
    %24 = vector.broadcast %23 : vector<64x1xf32> to vector<64x128xf32>
    %25 = arith.mulf %20, %24 : vector<64x128xf32>
    %26 = vector.broadcast %6 : vector<1x128xf32> to vector<64x128xf32>
    %27 = arith.mulf %25, %26 : vector<64x128xf32>
    %28 = vector.broadcast %7 : vector<1x128xf32> to vector<64x128xf32>
    %29 = arith.addf %27, %28 : vector<64x128xf32>
    %30 = arith.truncf %29 : vector<64x128xf32> to vector<64x128xbf16>
    %c0_12 = arith.constant 0 : index
    %c0_13 = arith.constant 0 : index
    %31 = vector.load %arg5[%c0_12, %c0_13] : memref<128x128xbf16, #tpu.memory_space<vmem>>, vector<128x128xbf16>
    %cst_14 = arith.constant dense<0.000000e+00> : vector<64x128xf32>
    %32 = tpu.matmul %30, %31, %cst_14 {dimension_numbers = #tpu.dot_dimension_numbers<[1], [1], [0], [0], [0, 0, 1, 0], [], []>} : vector<64x128xbf16>, vector<128x128xbf16>, vector<64x128xf32> -> vector<64x128xf32>
    %33 = arith.truncf %32 : vector<64x128xf32> to vector<64x128xbf16>
    %c0_15 = arith.constant 0 : index
    %c0_16 = arith.constant 0 : index
    %34 = vector.load %arg6[%c0_15, %c0_16] : memref<64x128xbf16, #tpu.memory_space<vmem>>, vector<64x128xbf16>
    tpu.vector_store %arg6[%c0_15, %c0_16], %33 {strides = array<i32>} : memref<64x128xbf16, #tpu.memory_space<vmem>>, vector<64x128xbf16>,
    return
  }
  func.func @transform_0(%arg0: i32, %arg1: i32) -> (i32, i32) {
    %c0_i32 = arith.constant 0 : i32
    %c0_i32_0 = arith.constant 0 : i32
    return %arg0, %c0_i32 : i32, i32
  }
  func.func @transform_1(%arg0: i32, %arg1: i32) -> (i32, i32) {
    %c0_i32 = arith.constant 0 : i32
    %c0_i32_0 = arith.constant 0 : i32
    %c0_i32_1 = arith.constant 0 : i32
    return %c0_i32, %c0_i32_0 : i32, i32
  }
  func.func @transform_2(%arg0: i32, %arg1: i32) -> (i32, i32) {
    %c0_i32 = arith.constant 0 : i32
    %c0_i32_0 = arith.constant 0 : i32
    %c0_i32_1 = arith.constant 0 : i32
    return %c0_i32, %c0_i32_0 : i32, i32
  }
  func.func @transform_3(%arg0: i32, %arg1: i32) -> (i32, i32) {
    %c0_i32 = arith.constant 0 : i32
    %c0_i32_0 = arith.constant 0 : i32
    return %arg1, %c0_i32 : i32, i32
  }
  func.func @transform_4(%arg0: i32, %arg1: i32) -> (i32, i32) {
    %c0_i32 = arith.constant 0 : i32
    return %arg0, %arg1 : i32, i32
  }
}

</mosaic_0001>

<bundles_post_ra>
// kernel: transformer_decoder.2
= control target key start
LH: loop header
LB: loop body
LE: loop exit
PB: predicated region body
PF: predicated region fallthrough
CT: control target
= control target key end

     0   :  { %8 = vsyncpa [#allocation3], 0  ;;  %s1206_s0 = inlined_call_operand.hbm [shape: f32[128,128], index: 0, kind: input, shape index: {}]   ;;  %s1207_s1 = inlined_call_operand.hbm [shape: f32[128,128], index: 1, kind: input, shape index: {}]   ;;  %s1208_s2 = inlined_call_operand.vmem [shape: f32[8,128], index: 2, kind: input, shape index: {}]   ;;  %s1209_s3 = inlined_call_operand.vmem [shape: bf16[128,128], index: 3, kind: output, shape index: {}]  }
   0x1   :  { %s14_s14 = sshll.u32 %s1206_s0, 4  ;;  %s15_s14 = int_to_ptr.hbm [resolvable:$true] %s14_s14 }
   0x2   :  { %9 = vsyncpa [#allocation5], 0  ;;  %s735_s15 = smov [#allocation2]   ;;  %s27_s19 = sshll.u32 %s1207_s1, 4  ;;  %s28_s19 = int_to_ptr.hbm [resolvable:$true] %s27_s19 }
   0x3   :  { %s16_s16 = sshll.u32 %s735_s15, 4  ;;  %s736_s20 = smov 128   ;;  %s17_s16 = int_to_ptr.vmem [resolvable:$true] %s16_s16 }
   0x4   :  { %s737_s21 = smov 8   ;;  %s738_s22 = smov [#allocation4]  }
   0x5   :  { %22 = dma.hbm_to_vmem [thread:$0]  %s15_s14, 2048, %s17_s16, [#allocation3], %s736_s20, %s736_s20, %s737_s21  }
   0x6   :  { %s29_s23 = sshll.u32 %s738_s22, 4  ;;  %s30_s23 = int_to_ptr.vmem [resolvable:$true] %s29_s23 }
   0x7   :  { %35 = dma.hbm_to_vmem [thread:$0]  %s28_s19, 2048, %s30_s23, [#allocation5], %s736_s20, %s736_s20, %s737_s21  }
   0x8   :  { %731 = dma.done.wait [#allocation3], 2048  }
   0x9   :  { %732 = vsyncadd [#allocation3], 4294965248 }
   0xa   :  { %733 = dma.done.wait [#allocation5], 2048  }
   0xb   :  { %734 = vsyncadd [#allocation5], 4294965248  ;;  %v77_v0 = vld [vmem:[#allocation4 + $0x78] sm:$0xff]  ;;  %v76_v1 = vld [vmem:[#allocation4 + $0x70] sm:$0xff] }
   0xc   :  { %80 = vmatpush.msra.mxu0 %v77_v0  ;;  %593 = vmatpush.msra.mxu1 %v77_v0  ;;  %v75_v2 = vld [vmem:[#allocation4 + $0x68] sm:$0xff]  ;;  %v74_v3 = vld [vmem:[#allocation4 + $0x60] sm:$0xff]  ;;  %v73_v4 = vld [vmem:[#allocation4 + $0x58] sm:$0xff] }
   0xd   :  { %594 = vmatpush.msra.mxu2 %v77_v0  ;;  %595 = vmatpush.msra.mxu3 %v77_v0  ;;  %v72_v5 = vld [vmem:[#allocation4 + $0x50] sm:$0xff]  ;;  %v71_v6 = vld [vmem:[#allocation4 + $0x48] sm:$0xff]  ;;  %v70_v7 = vld [vmem:[#allocation4 + $0x40] sm:$0xff] }
   0xe   :  { %81 = vmatpush.msra.mxu0 %v76_v1  ;;  %596 = vmatpush.msra.mxu1 %v76_v1  ;;  %v69_v8 = vld [vmem:[#allocation4 + $0x38] sm:$0xff]  ;;  %v68_v9 = vld [vmem:[#allocation4 + $0x30] sm:$0xff]  ;;  %v67_v10 = vld [vmem:[#allocation4 + $0x28] sm:$0xff] }
   0xf   :  { %597 = vmatpush.msra.mxu2 %v76_v1  ;;  %598 = vmatpush.msra.mxu3 %v76_v1  ;;  %v66_v11 = vld [vmem:[#allocation4 + $0x20] sm:$0xff]  ;;  %v65_v12 = vld [vmem:[#allocation4 + $0x18] sm:$0xff]  ;;  %v64_v13 = vld [vmem:[#allocation4 + $0x10] sm:$0xff]  ;;  %v739_v1 = vmov 128.0  }
  0x10   :  { %82 = vmatpush.msra.mxu0 %v75_v2  ;;  %599 = vmatpush.msra.mxu1 %v75_v2  ;;  %v63_v14 = vld [vmem:[#allocation4 + $0x8] sm:$0xff]  ;;  %v62_v15 = vld [vmem:[#allocation4] sm:$0xff]  ;;  %v48_v24 = vld [vmem:[#allocation2 + $0x10] sm:$0xff]  ;;  %649 = vrcp.f32 %v739_v1 }
  0x11   :  { %600 = vmatpush.msra.mxu2 %v75_v2  ;;  %601 = vmatpush.msra.mxu3 %v75_v2  ;;  %v46_v16 = vld [vmem:[#allocation2] sm:$0xff]  ;;  %v47_v20 = vld [vmem:[#allocation2 + $0x8] sm:$0xff]  ;;  %v52_v25 = vld [vmem:[#allocation2 + $0x30] sm:$0xff] }
  0x12   :  { %83 = vmatpush.msra.mxu0 %v74_v3  ;;  %602 = vmatpush.msra.mxu1 %v74_v3  ;;  %v50_v17 = vld [vmem:[#allocation2 + $0x20] sm:$0xff]  ;;  %v51_v21 = vld [vmem:[#allocation2 + $0x28] sm:$0xff]  ;;  %v56_v26 = vld [vmem:[#allocation2 + $0x50] sm:$0xff] }
  0x13   :  { %603 = vmatpush.msra.mxu2 %v74_v3  ;;  %604 = vmatpush.msra.mxu3 %v74_v3  ;;  %v54_v18 = vld [vmem:[#allocation2 + $0x40] sm:$0xff]  ;;  %v55_v22 = vld [vmem:[#allocation2 + $0x48] sm:$0xff]  ;;  %v60_v27 = vld [vmem:[#allocation2 + $0x70] sm:$0xff] }
  0x14   :  { %84 = vmatpush.msra.mxu0 %v73_v4  ;;  %605 = vmatpush.msra.mxu1 %v73_v4  ;;  %v58_v19 = vld [vmem:[#allocation2 + $0x60] sm:$0xff]  ;;  %v59_v23 = vld [vmem:[#allocation2 + $0x68] sm:$0xff]  ;;  %v49_v28 = vld [vmem:[#allocation2 + $0x18] sm:$0xff] }
  0x15   :  { %606 = vmatpush.msra.mxu2 %v73_v4  ;;  %607 = vmatpush.msra.mxu3 %v73_v4  ;;  %v53_v29 = vld [vmem:[#allocation2 + $0x38] sm:$0xff]  ;;  %v646_v32 = vld [vmem:[%s1208_s2] ss:$0 sm:$0xff] }
  0x16   :  { %85 = vmatpush.msra.mxu0 %v72_v5  ;;  %608 = vmatpush.msra.mxu1 %v72_v5  ;;  %v57_v30 = vld [vmem:[#allocation2 + $0x58] sm:$0xff]  ;;  %v650_v2 = vpop.eup %649 }
  0x17   :  { %609 = vmatpush.msra.mxu2 %v72_v5  ;;  %610 = vmatpush.msra.mxu3 %v72_v5  ;;  %v61_v31 = vld [vmem:[#allocation2 + $0x78] sm:$0xff]  ;;  %v180_v3 = vmul.f32 128.0, %v650_v2  ;;  %vm184_vm0 = vweird.f32 %v650_v2 }
  0x18   :  { %86 = vmatpush.msra.mxu0 %v71_v6  ;;  %611 = vmatpush.msra.mxu1 %v71_v6 }
  0x19   :  { %612 = vmatpush.msra.mxu2 %v71_v6  ;;  %613 = vmatpush.msra.mxu3 %v71_v6  ;;  %v181_v4 = vsub.f32 1.0, %v180_v3 }
  0x1a   :  { %87 = vmatpush.msra.mxu0 %v70_v7  ;;  %614 = vmatpush.msra.mxu1 %v70_v7 }
  0x1b   :  { %615 = vmatpush.msra.mxu2 %v70_v7  ;;  %616 = vmatpush.msra.mxu3 %v70_v7  ;;  %v182_v5 = vmul.f32 %v650_v2, %v181_v4 }
  0x1c   :  { %88 = vmatpush.msra.mxu0 %v69_v8  ;;  %617 = vmatpush.msra.mxu1 %v69_v8 }
  0x1d   :  { %618 = vmatpush.msra.mxu2 %v69_v8  ;;  %619 = vmatpush.msra.mxu3 %v69_v8  ;;  %v183_v6 = vadd.f32 %v650_v2, %v182_v5 }
  0x1e   :  { %89 = vmatpush.msra.mxu0 %v68_v9  ;;  %620 = vmatpush.msra.mxu1 %v68_v9 }
  0x1f   :  { %621 = vmatpush.msra.mxu2 %v68_v9  ;;  %622 = vmatpush.msra.mxu3 %v68_v9  ;;  %v811_v7 = vsel %vm184_vm0, %v650_v2, %v183_v6 }
  0x20   :  { %90 = vmatpush.msra.mxu0 %v67_v10  ;;  %623 = vmatpush.msra.mxu1 %v67_v10 }
  0x21   :  { %624 = vmatpush.msra.mxu2 %v67_v10  ;;  %625 = vmatpush.msra.mxu3 %v67_v10 }
  0x22   :  { %91 = vmatpush.msra.mxu0 %v66_v11  ;;  %626 = vmatpush.msra.mxu1 %v66_v11 }
  0x23   :  { %627 = vmatpush.msra.mxu2 %v66_v11  ;;  %628 = vmatpush.msra.mxu3 %v66_v11 }
  0x24   :  { %92 = vmatpush.msra.mxu0 %v65_v12  ;;  %629 = vmatpush.msra.mxu1 %v65_v12 }
  0x25   :  { %630 = vmatpush.msra.mxu2 %v65_v12  ;;  %631 = vmatpush.msra.mxu3 %v65_v12 }
  0x26   :  { %93 = vmatpush.msra.mxu0 %v64_v13  ;;  %632 = vmatpush.msra.mxu1 %v64_v13 }
  0x27   :  { %633 = vmatpush.msra.mxu2 %v64_v13  ;;  %634 = vmatpush.msra.mxu3 %v64_v13 }
  0x28   :  { %94 = vmatpush.msra.mxu0 %v63_v14  ;;  %635 = vmatpush.msra.mxu1 %v63_v14 }
  0x29   :  { %636 = vmatpush.msra.mxu2 %v63_v14  ;;  %637 = vmatpush.msra.mxu3 %v63_v14 }
  0x2a   :  { %95 = vmatpush.msra.mxu0 %v62_v15  ;;  %638 = vmatpush.msra.mxu1 %v62_v15 }
  0x2b   :  { %639 = vmatpush.msra.mxu2 %v62_v15  ;;  %640 = vmatpush.msra.mxu3 %v62_v15 }
  0x2c   :  { %96 = vmatmul.f32.vlgmr.msra.gmra.mxu0 %v46_v16  ;;  %108 = vmatmul.f32.vlgmr.msra.gmra.mxu1 %v50_v17 }
  0x2d   :  { %120 = vmatmul.f32.vlgmr.msra.gmra.mxu2 %v54_v18  ;;  %132 = vmatmul.f32.vlgmr.msra.gmra.mxu3 %v58_v19 }
  0x34   :  { %99 = vmatmul.f32.gmra.mxu0 %v47_v20  ;;  %111 = vmatmul.f32.gmra.mxu1 %v51_v21 }
  0x35   :  { %123 = vmatmul.f32.gmra.mxu2 %v55_v22  ;;  %135 = vmatmul.f32.gmra.mxu3 %v59_v23 }
  0x3c   :  { %102 = vmatmul.f32.gmra.mxu0 %v48_v24  ;;  %114 = vmatmul.f32.gmra.mxu1 %v52_v25 }
  0x3d   :  { %126 = vmatmul.f32.gmra.mxu2 %v56_v26  ;;  %138 = vmatmul.f32.gmra.mxu3 %v60_v27 }
  0x44   :  { %105 = vmatmul.f32.gmra.mxu0 %v49_v28  ;;  %117 = vmatmul.f32.gmra.mxu1 %v53_v29 }
  0x45   :  { %129 = vmatmul.f32.gmra.mxu2 %v57_v30  ;;  %141 = vmatmul.f32.gmra.mxu3 %v61_v31 }
  0xa9   :  { %v97_v33 = vpop.f32.mrf.mxu0  ;;  %v109_v34 = vpop.f32.mrf.mxu1 }
  0xaa   :  { %v98_v35 = vadd.f32 %v646_v32, %v97_v33  ;;  %v110_v36 = vadd.f32 %v646_v32, %v109_v34 }
  0xac   :  { %155 = vadd.xlane.f32.xlu2 %v110_v36  ;;  %147 = vadd.xlane.f32.xlu0 %v98_v35 }
  0xb0   :  { %v121_v37 = vpop.f32.mrf.mxu2  ;;  %v133_v38 = vpop.f32.mrf.mxu3 }
  0xb1   :  { %v769_v39 = vadd.f32 %v646_v32, %v121_v37  ;;  %v771_v40 = vadd.f32 %v646_v32, %v133_v38  ;;  %v100_v41 = vpop.f32.mrf.mxu0  ;;  %v112_v42 = vpop.f32.mrf.mxu1 }
  0xb2   :  { %v775_v45 = vadd.f32 %v646_v32, %v112_v42  ;;  %v779_v47 = vadd.f32 %v646_v32, %v100_v41 }
  0xb4   :  { %163 = vadd.xlane.f32.xlu2 %v769_v39  ;;  %171 = vadd.xlane.f32.xlu0 %v771_v40 }
  0xb8   :  { %v124_v43 = vpop.f32.mrf.mxu2  ;;  %v136_v44 = vpop.f32.mrf.mxu3 }
  0xb9   :  { %v777_v46 = vadd.f32 %v646_v32, %v136_v44  ;;  %v103_v48 = vpop.f32.mrf.mxu0  ;;  %v786_v51 = vadd.f32 %v646_v32, %v124_v43  ;;  %v115_v53 = vpop.f32.mrf.mxu1 }
  0xba   :  { %v784_v49 = vadd.f32 %v646_v32, %v103_v48  ;;  %v792_v56 = vadd.f32 %v646_v32, %v115_v53 }
  0xbb   :  { %173 = vadd.xlane.f32.xlu1 %v777_v46 }
  0xbc   :  { %157 = vadd.xlane.f32.xlu2 %v775_v45  ;;  %149 = vadd.xlane.f32.xlu0 %v779_v47 }
  0xc0   :  { %v127_v50 = vpop.f32.mrf.mxu2  ;;  %v139_v52 = vpop.f32.mrf.mxu3 }
  0xc1   :  { %v790_v54 = vadd.f32 %v646_v32, %v127_v50  ;;  %v106_v58 = vpop.f32.mrf.mxu0  ;;  %v799_v60 = vadd.f32 %v646_v32, %v139_v52  ;;  %v118_v63 = vpop.f32.mrf.mxu1 }
  0xc2   :  { %v801_v61 = vadd.f32 %v646_v32, %v106_v58  ;;  %v808_v0 = vadd.f32 %v646_v32, %v118_v63 }
  0xc3   :  { %151 = vadd.xlane.f32.xlu1 %v784_v49 }
  0xc4   :  { %165 = vadd.xlane.f32.xlu0 %v786_v51 }
  0xc8   :  { %v130_v55 = vpop.f32.mrf.mxu2  ;;  %v142_v59 = vpop.f32.mrf.mxu3 }
  0xc9   :  { %v794_v57 = vadd.f32 %v646_v32, %v130_v55  ;;  %v803_v62 = vadd.f32 %v646_v32, %v142_v59 }
  0xcb   :  { %169 = vadd.xlane.f32.xlu2 %v794_v57  ;;  %167 = vadd.xlane.f32.xlu1 %v790_v54 }
  0xcc   :  { %159 = vadd.xlane.f32.xlu0 %v792_v56 }
  0xd3   :  { %175 = vadd.xlane.f32.xlu2 %v799_v60  ;;  %153 = vadd.xlane.f32.xlu1 %v801_v61 }
  0xd4   :  { %177 = vadd.xlane.f32.xlu0 %v803_v62 }
  0xdb   :  { %161 = vadd.xlane.f32.xlu1 %v808_v0 }
 0x11f   :  { %v156_v8 = vpop.xlane.xlu2 %155  ;;  %v148_v9 = vpop.xlane.xlu0 %147 }
 0x120   :  { %v190_v10 = vmul.f32 %v811_v7, %v156_v8  ;;  %v186_v11 = vmul.f32 %v811_v7, %v148_v9 }
 0x122   :  { %v815_v12 = vsub.f32 %v110_v36, %v190_v10  ;;  %v817_v13 = vsub.f32 %v98_v35, %v186_v11 }
 0x124   :  { %v222_v14 = vmul.f32 %v815_v12, %v815_v12  ;;  %v218_v15 = vmul.f32 %v817_v13, %v817_v13 }
 0x126   :  { %242 = vadd.xlane.f32.xlu2 %v222_v14  ;;  %234 = vadd.xlane.f32.xlu1 %v218_v15 }
 0x127   :  { %v164_v16 = vpop.xlane.xlu2 %163  ;;  %v172_v17 = vpop.xlane.xlu0 %171 }
 0x128   :  { %v194_v18 = vmul.f32 %v811_v7, %v164_v16  ;;  %v198_v19 = vmul.f32 %v811_v7, %v172_v17 }
 0x12a   :  { %v826_v20 = vsub.f32 %v769_v39, %v194_v18  ;;  %v829_v21 = vsub.f32 %v771_v40, %v198_v19 }
 0x12c   :  { %v226_v22 = vmul.f32 %v826_v20, %v826_v20  ;;  %v230_v23 = vmul.f32 %v829_v21, %v829_v21 }
 0x12e   :  { %v174_v24 = vpop.xlane.xlu1 %173  ;;  %250 = vadd.xlane.f32.xlu0 %v226_v22  ;;  %258 = vadd.xlane.f32.xlu1 %v230_v23 }
 0x12f   :  { %v158_v25 = vpop.xlane.xlu2 %157  ;;  %v150_v26 = vpop.xlane.xlu0 %149  ;;  %v199_v6 = vmul.f32 %v811_v7, %v174_v24 }
 0x130   :  { %v191_v27 = vmul.f32 %v811_v7, %v158_v25  ;;  %v187_v28 = vmul.f32 %v811_v7, %v150_v26 }
 0x131   :  { %v903_v10 = vsub.f32 %v777_v46, %v199_v6 }
 0x132   :  { %v838_v29 = vsub.f32 %v775_v45, %v191_v27  ;;  %v841_v30 = vsub.f32 %v779_v47, %v187_v28 }
 0x134   :  { %v223_v31 = vmul.f32 %v838_v29, %v838_v29  ;;  %v219_v32 = vmul.f32 %v841_v30, %v841_v30 }
 0x136   :  { %v152_v33 = vpop.xlane.xlu1 %151  ;;  %244 = vadd.xlane.f32.xlu0 %v223_v31  ;;  %236 = vadd.xlane.f32.xlu2 %v219_v32 }
 0x137   :  { %v188_v34 = vmul.f32 %v811_v7, %v152_v33  ;;  %v166_v35 = vpop.xlane.xlu0 %165 }
 0x138   :  { %v195_v36 = vmul.f32 %v811_v7, %v166_v35 }
 0x139   :  { %v850_v37 = vsub.f32 %v784_v49, %v188_v34 }
 0x13a   :  { %v853_v38 = vsub.f32 %v786_v51, %v195_v36 }
 0x13b   :  { %v220_v39 = vmul.f32 %v850_v37, %v850_v37 }
 0x13c   :  { %v227_v40 = vmul.f32 %v853_v38, %v853_v38 }
 0x13e   :  { %v170_v41 = vpop.xlane.xlu2 %169  ;;  %v168_v42 = vpop.xlane.xlu1 %167  ;;  %238 = vadd.xlane.f32.xlu0 %v220_v39  ;;  %252 = vadd.xlane.f32.xlu1 %v227_v40 }
 0x13f   :  { %v197_v43 = vmul.f32 %v811_v7, %v170_v41  ;;  %v196_v44 = vmul.f32 %v811_v7, %v168_v42  ;;  %v160_v45 = vpop.xlane.xlu0 %159 }
 0x140   :  { %v192_v47 = vmul.f32 %v811_v7, %v160_v45 }
 0x141   :  { %v863_v48 = vsub.f32 %v794_v57, %v197_v43  ;;  %v866_v49 = vsub.f32 %v790_v54, %v196_v44 }
 0x142   :  { %v869_v50 = vsub.f32 %v792_v56, %v192_v47 }
 0x143   :  { %v228_v51 = vmul.f32 %v866_v49, %v866_v49  ;;  %v229_v52 = vmul.f32 %v863_v48, %v863_v48 }
 0x144   :  { %v224_v53 = vmul.f32 %v869_v50, %v869_v50 }
 0x145   :  { %254 = vadd.xlane.f32.xlu2 %v228_v51 }
 0x146   :  { %v176_v55 = vpop.xlane.xlu2 %175  ;;  %v154_v58 = vpop.xlane.xlu1 %153  ;;  %256 = vadd.xlane.f32.xlu0 %v229_v52  ;;  %246 = vadd.xlane.f32.xlu1 %v224_v53 }
 0x147   :  { %v200_v54 = vmul.f32 %v811_v7, %v176_v55  ;;  %v189_v57 = vmul.f32 %v811_v7, %v154_v58  ;;  %v178_v63 = vpop.xlane.xlu0 %177 }
 0x148   :  { %v201_v1 = vmul.f32 %v811_v7, %v178_v63 }
 0x149   :  { %v880_v56 = vsub.f32 %v799_v60, %v200_v54  ;;  %v883_v59 = vsub.f32 %v801_v61, %v189_v57 }
 0x14a   :  { %v892_v60 = vsub.f32 %v803_v62, %v201_v1  ;;  %v231_v62 = vmul.f32 %v903_v10, %v903_v10 }
 0x14b   :  { %v232_v2 = vmul.f32 %v880_v56, %v880_v56  ;;  %v221_v3 = vmul.f32 %v883_v59, %v883_v59 }
 0x14c   :  { %v233_v9 = vmul.f32 %v892_v60, %v892_v60 }
 0x14e   :  { %v162_v4 = vpop.xlane.xlu1 %161  ;;  %262 = vadd.xlane.f32.xlu0 %v232_v2  ;;  %240 = vadd.xlane.f32.xlu1 %v221_v3 }
 0x14f   :  { %v193_v5 = vmul.f32 %v811_v7, %v162_v4 }
 0x151   :  { %v895_v61 = vsub.f32 %v808_v0, %v193_v5 }
 0x153   :  { %v225_v8 = vmul.f32 %v895_v61, %v895_v61 }
 0x155   :  { %248 = vadd.xlane.f32.xlu2 %v225_v8 }
 0x156   :  { %264 = vadd.xlane.f32.xlu1 %v233_v9 }
 0x15d   :  { %260 = vadd.xlane.f32.xlu2 %v231_v62 }
 0x199   :  { %v243_v11 = vpop.xlane.xlu2 %242  ;;  %v235_v0 = vpop.xlane.xlu1 %234 }
 0x19a   :  { %v270_v14 = vmul.f32 %v243_v11, %v811_v7  ;;  %v266_v15 = vmul.f32 %v235_v0, %v811_v7 }
 0x19c   :  { %v286_v16 = vadd.f32 1e-05, %v270_v14  ;;  %v282_v17 = vadd.f32 1e-05, %v266_v15 }
 0x19e   :  { %651 = vrsqrt.f32 %v286_v16  ;;  %vm344_vm2 = vweird.f32 %v286_v16  ;;  %vm304_vm5 = vweird.f32 %v282_v17 }
 0x19f   :  { %653 = vrsqrt.f32 %v282_v17 }
 0x1a1   :  { %v251_v18 = vpop.xlane.xlu0 %250  ;;  %v259_v27 = vpop.xlane.xlu1 %258 }
 0x1a2   :  { %v274_v19 = vmul.f32 %v251_v18, %v811_v7  ;;  %v278_v44 = vmul.f32 %v259_v27, %v811_v7 }
 0x1a4   :  { %v910_v22 = vpop.eup %651  ;;  %v912_v46 = vadd.f32 1e-05, %v274_v19  ;;  %v941_v63 = vadd.f32 1e-05, %v278_v44 }
 0x1a5   :  { %v914_v23 = vpop.eup %653  ;;  %v339_v24 = vmul.f32 %v910_v22, %v286_v16  ;;  %vm345_vm1 = vweird.f32 %v910_v22 }
 0x1a6   :  { %v299_v25 = vmul.f32 %v914_v23, %v282_v17  ;;  %655 = vrsqrt.f32 %v912_v46  ;;  %vm305_vm3 = vweird.f32 %v914_v23  ;;  %vm953_vm4 = vmor %vm344_vm2, %vm345_vm1  ;;  %vm384_vm7 = vweird.f32 %v912_v46 }
 0x1a7   :  { %v340_v26 = vmul.f32 %v910_v22, %v339_v24  ;;  %vm965_vm6 = vmor %vm304_vm5, %vm305_vm3  ;;  %v981_v24 = vld [vmem:[%s1208_s2 + $0x1] ss:$0 sm:$0xff] }
 0x1a8   :  { %v300_v28 = vmul.f32 %v914_v23, %v299_v25 }
 0x1a9   :  { %v237_v31 = vpop.xlane.xlu2 %236  ;;  %v245_v32 = vpop.xlane.xlu0 %244  ;;  %v341_v35 = vmul.f32 0.5, %v340_v26 }
 0x1aa   :  { %v267_v33 = vmul.f32 %v237_v31, %v811_v7  ;;  %v271_v34 = vmul.f32 %v245_v32, %v811_v7  ;;  %v301_v41 = vmul.f32 0.5, %v300_v28 }
 0x1ab   :  { %v342_v43 = vsub.f32 1.5, %v341_v35 }
 0x1ac   :  { %v923_v36 = vadd.f32 1e-05, %v267_v33  ;;  %v925_v39 = vadd.f32 1e-05, %v271_v34  ;;  %v927_v40 = vpop.eup %655  ;;  %v302_v47 = vsub.f32 1.5, %v301_v41 }
 0x1ad   :  { %v379_v42 = vmul.f32 %v927_v40, %v912_v46  ;;  %v343_v58 = vmul.f32 %v910_v22, %v342_v43  ;;  %vm385_vm8 = vweird.f32 %v927_v40 }
 0x1ae   :  { %657 = vrsqrt.f32 %v923_v36  ;;  %v303_v4 = vmul.f32 %v914_v23, %v302_v47  ;;  %vm314_vm9 = vweird.f32 %v923_v36  ;;  %vm1002_vm12 = vmor %vm384_vm7, %vm385_vm8  ;;  %vm354_vm13 = vweird.f32 %v925_v39 }
 0x1af   :  { %659 = vrsqrt.f32 %v925_v39  ;;  %v380_v45 = vmul.f32 %v927_v40, %v379_v42  ;;  %v347_v9 = vsel %vm953_vm4, %v910_v22, %v343_v58 }
 0x1b0   :  { %v307_v16 = vsel %vm965_vm6, %v914_v23, %v303_v4  ;;  %v462_v25 = vmul.f32 %v347_v9, %v815_v12 }
 0x1b1   :  { %v253_v51 = vpop.xlane.xlu1 %252  ;;  %v239_v52 = vpop.xlane.xlu0 %238  ;;  %v381_v54 = vmul.f32 0.5, %v380_v45  ;;  %v458_v34 = vmul.f32 %v307_v16, %v817_v13 }
 0x1b2   :  { %v275_v53 = vmul.f32 %v253_v51, %v811_v7  ;;  %v268_v55 = vmul.f32 %v239_v52, %v811_v7  ;;  %v479_v47 = vmul.f32 %v981_v24, %v462_v25 }
 0x1b3   :  { %v382_v62 = vsub.f32 1.5, %v381_v54 }
 0x1b4   :  { %v939_v57 = vpop.eup %657  ;;  %v943_v1 = vadd.f32 1e-05, %v275_v53  ;;  %v945_v2 = vadd.f32 1e-05, %v268_v55  ;;  %v475_v55 = vmul.f32 %v981_v24, %v458_v34 }
 0x1b5   :  { %v947_v3 = vpop.eup %659  ;;  %v309_v5 = vmul.f32 %v939_v57, %v923_v36  ;;  %v383_v23 = vmul.f32 %v927_v40, %v382_v62  ;;  %vm315_vm10 = vweird.f32 %v939_v57 }
 0x1b6   :  { %v349_v8 = vmul.f32 %v947_v3, %v925_v39  ;;  %661 = vrsqrt.f32 %v943_v1  ;;  %vm355_vm11 = vweird.f32 %v947_v3  ;;  %vm316_vm14 = vmor %vm314_vm9, %vm315_vm10  ;;  %v1026_v39 = vld [vmem:[%s1208_s2 + $0x2] ss:$0 sm:$0xff]  ;;  %vm394_vm1 = vweird.f32 %v943_v1 }
 0x1b7   :  { %v310_v11 = vmul.f32 %v939_v57, %v309_v5  ;;  %663 = vrsqrt.f32 %v945_v2  ;;  %v387_v52 = vsel %vm1002_vm12, %v927_v40, %v383_v23  ;;  %vm356_vm15 = vmor %vm354_vm13, %vm355_vm11  ;;  %vm324_vm8 = vweird.f32 %v945_v2 }
 0x1b8   :  { %665 = vrsqrt.f32 %v941_v63  ;;  %v350_v14 = vmul.f32 %v947_v3, %v349_v8  ;;  %v255_v15 = vpop.xlane.xlu2 %254  ;;  %v466_v9 = vmul.f32 %v387_v52, %v826_v20 }
 0x1b9   :  { %v311_v17 = vmul.f32 0.5, %v310_v11  ;;  %v276_v18 = vmul.f32 %v255_v15, %v811_v7  ;;  %v247_v19 = vpop.xlane.xlu1 %246  ;;  %v257_v22 = vpop.xlane.xlu0 %256  ;;  %v496_v11 = vadd.f32 %v1026_v39, %v479_v47  ;;  %v492_v15 = vadd.f32 %v1026_v39, %v475_v55 }
 0x1ba   :  { %v351_v26 = vmul.f32 0.5, %v350_v14  ;;  %v272_v27 = vmul.f32 %v247_v19, %v811_v7  ;;  %v277_v28 = vmul.f32 %v257_v22, %v811_v7 }
 0x1bb   :  { %v312_v31 = vsub.f32 1.5, %v311_v17  ;;  %v988_v32 = vadd.f32 1e-05, %v276_v18 }
 0x1bc   :  { %v990_v33 = vpop.eup %661  ;;  %v352_v35 = vsub.f32 1.5, %v351_v26  ;;  %v994_v12 = vadd.f32 1e-05, %v272_v27  ;;  %v1010_v44 = vadd.f32 1e-05, %v277_v28  ;;  %v483_v26 = vmul.f32 %v981_v24, %v466_v9 }
 0x1bd   :  { %v996_v41 = vpop.eup %663  ;;  %v313_v43 = vmul.f32 %v939_v57, %v312_v31  ;;  %v389_v13 = vmul.f32 %v990_v33, %v943_v1  ;;  %667 = vrsqrt.f32 %v988_v32  ;;  %vm395_vm0 = vweird.f32 %v990_v33 }
 0x1be   :  { %v1012_v45 = vpop.eup %665  ;;  %v353_v46 = vmul.f32 %v947_v3, %v352_v35  ;;  %v319_v51 = vmul.f32 %v996_v41, %v945_v2  ;;  %669 = vrsqrt.f32 %v994_v12  ;;  %vm396_vm2 = vmor %vm394_vm1, %vm395_vm0  ;;  %v500_v52 = vadd.f32 %v1026_v39, %v483_v26 }
 0x1bf   :  { %v317_v53 = vsel %vm316_vm14, %v939_v57, %v313_v43  ;;  %v390_v36 = vmul.f32 %v990_v33, %v389_v13  ;;  %v419_v40 = vmul.f32 %v1012_v45, %v941_v63  ;;  %671 = vrsqrt.f32 %v1010_v44 }
 0x1c0   :  { %v459_v58 = vmul.f32 %v317_v53, %v841_v30  ;;  %v357_v54 = vsel %vm356_vm15, %v947_v3, %v353_v46  ;;  %v320_v4 = vmul.f32 %v996_v41, %v319_v51  ;;  %vm325_vm3 = vweird.f32 %v996_v41 }
 0x1c1   :  { %v463_v57 = vmul.f32 %v357_v54, %v838_v29  ;;  %v391_v5 = vmul.f32 0.5, %v390_v36  ;;  %v241_v6 = vpop.xlane.xlu1 %240  ;;  %v263_v8 = vpop.xlane.xlu0 %262  ;;  %v420_v46 = vmul.f32 %v1012_v45, %v419_v40  ;;  %vm404_vm5 = vweird.f32 %v988_v32  ;;  %vm1099_vm9 = vmor %vm324_vm8, %vm325_vm3 }
 0x1c2   :  { %v476_v62 = vmul.f32 %v981_v24, %v459_v58  ;;  %v269_v30 = vmul.f32 %v241_v6, %v811_v7  ;;  %v280_v3 = vmul.f32 %v263_v8, %v811_v7  ;;  %v321_v17 = vmul.f32 0.5, %v320_v4 }
 0x1c3   :  { %v480_v0 = vmul.f32 %v981_v24, %v463_v57  ;;  %v392_v14 = vsub.f32 1.5, %v391_v5  ;;  %v668_v29 = vpop.eup %667  ;;  %vm414_vm10 = vweird.f32 %v1010_v44  ;;  %vm364_vm15 = vweird.f32 %v994_v12 }
 0x1c4   :  { %v493_v16 = vadd.f32 %v1026_v39, %v476_v62  ;;  %v1053_v20 = vadd.f32 1e-05, %v269_v30  ;;  %v1055_v18 = vpop.eup %669  ;;  %v399_v25 = vmul.f32 %v668_v29, %v988_v32  ;;  %v1064_v23 = vadd.f32 1e-05, %v280_v3 }
 0x1c5   :  { %v497_v19 = vadd.f32 %v1026_v39, %v480_v0  ;;  %v393_v22 = vmul.f32 %v990_v33, %v392_v14  ;;  %v359_v28 = vmul.f32 %v1055_v18, %v994_v12  ;;  %v672_v31 = vpop.eup %671  ;;  %v322_v43 = vsub.f32 1.5, %v321_v17 }
 0x1c6   :  { %v549_v27 = vpack.c.bf16 %v493_v16, %v492_v15  ;;  %v400_v42 = vmul.f32 %v668_v29, %v399_v25  ;;  %673 = vrsqrt.f32 %v1053_v20  ;;  %v409_v13 = vmul.f32 %v672_v31, %v1010_v44 }
 0x1c7   :  { %v559_v34 = vpack.c.bf16 %v497_v19, %v496_v11  ;;  %v397_v35 = vsel %vm396_vm2, %v990_v33, %v393_v22  ;;  %v360_v51 = vmul.f32 %v1055_v18, %v359_v28  ;;  %675 = vrsqrt.f32 %v1064_v23 }
 0x1c8   :  { %550 = vst [vmem:[%s1209_s3] sm:$0xff] %v549_v27   ;;  %v467_v1 = vmul.f32 %v397_v35, %v853_v38  ;;  %v249_v47 = vpop.xlane.xlu2 %248  ;;  %v401_v33 = vmul.f32 0.5, %v400_v42  ;;  %v410_v36 = vmul.f32 %v672_v31, %v409_v13  ;;  %vm405_vm4 = vweird.f32 %v668_v29 }
 0x1c9   :  { %587 = vst [vmem:[%s1209_s3 + $0x10] sm:$0xff] %v559_v34   ;;  %v265_v38 = vpop.xlane.xlu1 %264  ;;  %v273_v58 = vmul.f32 %v249_v47, %v811_v7  ;;  %v323_v4 = vmul.f32 %v996_v41, %v322_v43  ;;  %v361_v6 = vmul.f32 0.5, %v360_v51  ;;  %vm406_vm6 = vmor %vm404_vm5, %vm405_vm4  ;;  %vm415_vm7 = vweird.f32 %v672_v31 }
 0x1ca   :  { %v484_v53 = vmul.f32 %v981_v24, %v467_v1  ;;  %v402_v55 = vsub.f32 1.5, %v401_v33  ;;  %v411_v40 = vmul.f32 0.5, %v410_v36  ;;  %v281_v9 = vmul.f32 %v265_v38, %v811_v7  ;;  %vm416_vm11 = vmor %vm414_vm10, %vm415_vm7 }
 0x1cb   :  { %v1086_v8 = vadd.f32 1e-05, %v273_v58  ;;  %v421_v16 = vmul.f32 0.5, %v420_v46  ;;  %v362_v17 = vsub.f32 1.5, %v361_v6  ;;  %v327_v25 = vsel %vm1099_vm9, %v996_v41, %v323_v4 }
 0x1cc   :  { %v501_v54 = vadd.f32 %v1026_v39, %v484_v53  ;;  %v674_v57 = vpop.eup %673  ;;  %v403_v5 = vmul.f32 %v668_v29, %v402_v55  ;;  %v412_v30 = vsub.f32 1.5, %v411_v40  ;;  %v1108_v22 = vadd.f32 1e-05, %v281_v9 }
 0x1cd   :  { %v329_v3 = vmul.f32 %v674_v57, %v1053_v20  ;;  %677 = vrsqrt.f32 %v1086_v8  ;;  %v1092_v32 = vpop.eup %675  ;;  %vm365_vm12 = vweird.f32 %v1055_v18  ;;  %vm335_vm13 = vweird.f32 %v674_v57 }
 0x1ce   :  { %v569_v62 = vpack.c.bf16 %v501_v54, %v500_v52  ;;  %v407_v11 = vsel %vm406_vm6, %v668_v29, %v403_v5  ;;  %v413_v15 = vmul.f32 %v672_v31, %v412_v30  ;;  %v439_v19 = vmul.f32 %v1092_v32, %v1064_v23  ;;  %vm1132_vm1 = vmor %vm364_vm15, %vm365_vm12 }
 0x1cf   :  { %v468_v14 = vmul.f32 %v407_v11, %v866_v49  ;;  %v330_v2 = vmul.f32 %v674_v57, %v329_v3  ;;  %679 = vrsqrt.f32 %v1108_v22  ;;  %v460_v41 = vmul.f32 %v327_v25, %v850_v37 }
 0x1d0   :  { %589 = vst [vmem:[%s1209_s3 + $0x20] sm:$0xff] %v569_v62   ;;  %v261_v29 = vpop.xlane.xlu2 %260  ;;  %v417_v26 = vsel %vm416_vm11, %v672_v31, %v413_v15  ;;  %v440_v34 = vmul.f32 %v1092_v32, %v439_v19  ;;  %v363_v31 = vmul.f32 %v1055_v18, %v362_v17  ;;  %vm334_vm14 = vweird.f32 %v1053_v20 }
 0x1d1   :  { %v331_v49 = vmul.f32 0.5, %v330_v2  ;;  %v279_v27 = vmul.f32 %v261_v29, %v811_v7  ;;  %v485_v44 = vmul.f32 %v981_v24, %v468_v14  ;;  %v469_v28 = vmul.f32 %v417_v26, %v863_v48  ;;  %vm336_vm0 = vmor %vm334_vm14, %vm335_vm13 }
 0x1d2   :  { %v441_v43 = vmul.f32 0.5, %v440_v34  ;;  %v422_v33 = vsub.f32 1.5, %v421_v16  ;;  %v477_v36 = vmul.f32 %v981_v24, %v460_v41  ;;  %v367_v12 = vsel %vm1132_vm1, %v1055_v18, %v363_v31 }
 0x1d3   :  { %v332_v35 = vsub.f32 1.5, %v331_v49  ;;  %v1119_v42 = vadd.f32 1e-05, %v279_v27  ;;  %v678_v1 = vpop.eup %677  ;;  %v486_v7 = vmul.f32 %v981_v24, %v469_v28  ;;  %v502_v47 = vadd.f32 %v1026_v39, %v485_v44 }
 0x1d4   :  { %v369_v48 = vmul.f32 %v678_v1, %v1086_v8  ;;  %v442_v37 = vsub.f32 1.5, %v441_v43  ;;  %vm445_vm2 = vweird.f32 %v1092_v32  ;;  %vm425_vm3 = vweird.f32 %v1012_v45 }
 0x1d5   :  { %v333_v13 = vmul.f32 %v674_v57, %v332_v35  ;;  %681 = vrsqrt.f32 %v1119_v42  ;;  %v503_v46 = vadd.f32 %v1026_v39, %v486_v7  ;;  %v680_v53 = vpop.eup %679  ;;  %vm444_vm4 = vweird.f32 %v1064_v23 }
 0x1d6   :  { %v370_v52 = vmul.f32 %v678_v1, %v369_v48  ;;  %v443_v58 = vmul.f32 %v1092_v32, %v442_v37  ;;  %v449_v4 = vmul.f32 %v680_v53, %v1108_v22  ;;  %vm375_vm5 = vweird.f32 %v678_v1  ;;  %vm1156_vm6 = vmor %vm444_vm4, %vm445_vm2 }
 0x1d7   :  { %v337_v20 = vsel %vm336_vm0, %v674_v57, %v333_v13  ;;  %v574_v38 = vpack.c.bf16 %v503_v46, %v502_v47  ;;  %v423_v6 = vmul.f32 %v1012_v45, %v422_v33  ;;  %v494_v9 = vadd.f32 %v1026_v39, %v477_v36 }
 0x1d8   :  { %v461_v55 = vmul.f32 %v337_v20, %v883_v59  ;;  %v371_v54 = vmul.f32 0.5, %v370_v52  ;;  %v464_v59 = vmul.f32 %v367_v12, %v869_v50  ;;  %v450_v5 = vmul.f32 %v680_v53, %v449_v4 }
 0x1d9   :  { %590 = vst [vmem:[%s1209_s3 + $0x28] sm:$0xff] %v574_v38   ;;  %v447_v50 = vsel %vm1156_vm6, %v1092_v32, %v443_v58  ;;  %vm374_vm7 = vweird.f32 %v1086_v8  ;;  %vm424_vm8 = vweird.f32 %v941_v63  ;;  %vm455_vm11 = vweird.f32 %v680_v53 }
 0x1da   :  { %v478_v40 = vmul.f32 %v981_v24, %v461_v55  ;;  %v372_v57 = vsub.f32 1.5, %v371_v54  ;;  %v451_v11 = vmul.f32 0.5, %v450_v5  ;;  %vm376_vm9 = vmor %vm374_vm7, %vm375_vm5  ;;  %v481_v2 = vmul.f32 %v981_v24, %v464_v59 }
 0x1db   :  { %v682_v18 = vpop.eup %681  ;;  %vm1168_vm10 = vmor %vm424_vm8, %vm425_vm3  ;;  %v472_v63 = vmul.f32 %v447_v50, %v880_v56  ;;  %vm454_vm12 = vweird.f32 %v1108_v22  ;;  %vm434_vm15 = vweird.f32 %v1119_v42 }
 0x1dc   :  { %v495_v62 = vadd.f32 %v1026_v39, %v478_v40  ;;  %v429_v23 = vmul.f32 %v682_v18, %v1119_v42  ;;  %v373_v3 = vmul.f32 %v678_v1, %v372_v57  ;;  %v452_v16 = vsub.f32 1.5, %v451_v11  ;;  %vm456_vm13 = vmor %vm454_vm12, %vm455_vm11 }
 0x1dd   :  { %v427_v8 = vsel %vm1168_vm10, %v1012_v45, %v423_v6  ;;  %vm435_vm14 = vweird.f32 %v682_v18  ;;  %v498_v45 = vadd.f32 %v1026_v39, %v481_v2  ;;  %v489_v56 = vmul.f32 %v981_v24, %v472_v63 }
 0x1de   :  { %v554_v0 = vpack.c.bf16 %v495_v62, %v494_v9  ;;  %v430_v14 = vmul.f32 %v682_v18, %v429_v23  ;;  %v377_v29 = vsel %vm376_vm9, %v678_v1, %v373_v3  ;;  %v453_v19 = vmul.f32 %v680_v53, %v452_v16  ;;  %vm436_vm0 = vmor %vm434_vm15, %vm435_vm14 }
 0x1df   :  { %v465_v32 = vmul.f32 %v377_v29, %v895_v61  ;;  %v470_v49 = vmul.f32 %v427_v8, %v829_v21  ;;  %v506_v41 = vadd.f32 %v1026_v39, %v489_v56 }
 0x1e0   :  { %586 = vst [vmem:[%s1209_s3 + $0x8] sm:$0xff] %v554_v0   ;;  %v431_v17 = vmul.f32 0.5, %v430_v14  ;;  %v457_v27 = vsel %vm456_vm13, %v680_v53, %v453_v19 }
 0x1e1   :  { %v482_v25 = vmul.f32 %v981_v24, %v465_v32  ;;  %v473_v44 = vmul.f32 %v457_v27, %v892_v60  ;;  %v487_v1 = vmul.f32 %v981_v24, %v470_v49 }
 0x1e2   :  { %v432_v26 = vsub.f32 1.5, %v431_v17 }
 0x1e3   :  { %v499_v61 = vadd.f32 %v1026_v39, %v482_v25  ;;  %v490_v34 = vmul.f32 %v981_v24, %v473_v44  ;;  %v504_v7 = vadd.f32 %v1026_v39, %v487_v1 }
 0x1e4   :  { %v433_v28 = vmul.f32 %v682_v18, %v432_v26 }
 0x1e5   :  { %v564_v22 = vpack.c.bf16 %v499_v61, %v498_v45  ;;  %v507_v42 = vadd.f32 %v1026_v39, %v490_v34 }
 0x1e6   :  { %v437_v35 = vsel %vm436_vm0, %v682_v18, %v433_v28 }
 0x1e7   :  { %v471_v21 = vmul.f32 %v437_v35, %v903_v10  ;;  %588 = vst [vmem:[%s1209_s3 + $0x18] sm:$0xff] %v564_v22   ;;  %v584_v31 = vpack.c.bf16 %v507_v42, %v506_v41 }
 0x1e9   :  { %v488_v60 = vmul.f32 %v981_v24, %v471_v21  ;;  %592 = vst [vmem:[%s1209_s3 + $0x38] sm:$0xff] %v584_v31  }
 0x1eb   :  { %v505_v43 = vadd.f32 %v1026_v39, %v488_v60 }
 0x1ed   :  { %v579_v10 = vpack.c.bf16 %v505_v43, %v504_v7 }
 0x1ef   :  { %591 = vst [vmem:[%s1209_s3 + $0x30] sm:$0xff] %v579_v10  }
 0x1f0   :  { %544 = vsyncpa [#allocation3], 1 }
 0x1f1   :  { %545 = vsyncpa [#allocation5], 1 }

// kernel: transformer_decoder.3
= control target key start
LH: loop header
LB: loop body
LE: loop exit
PB: predicated region body
PF: predicated region fallthrough
CT: control target
= control target key end

     0   :  { %s1357_s0 = inlined_call_operand.hbm [shape: f32[128,128], index: 0, kind: input, shape index: {}]   ;;  %s1358_s1 = inlined_call_operand.hbm [shape: f32[128,128], index: 1, kind: input, shape index: {}]   ;;  %s1359_s2 = inlined_call_operand.vmem [shape: f32[8,128], index: 2, kind: input, shape index: {}]   ;;  %s1360_s3 = inlined_call_operand.vmem [shape: bf16[128,128], index: 3, kind: input, shape index: {}]   ;;  %s1361_s4 = inlined_call_operand.vmem [shape: bf16[128,128], index: 4, kind: output, shape index: {}]  }
   0x1   :  { %1362 = sst [smem:[#allocation8_spill]] %s1358_s1 }
   0x2   :  { %9 = vsyncpa [#allocation3], 0 }
   0x3   :  { %11 = vsyncpa [#allocation3 + $0x1], 0 }
   0x4   :  { %12 = vsyncpa [#allocation5], 0  ;;  %s1090_s15 = smov 0   ;;  %s1092_s16 = smov 0  }
   0x5   :  { %s1094_s17 = smov 0   ;;  %s1096_s18 = smov 0  }
   0x6   :  { %s1098_s19 = smov 0   ;;  %s1100_s20 = smov 0  }
   0x7 LB: > { %s759_s21 = sadd.s32 4294967295, %s1059_s20   ;;  %p50_p0 = scmp.ne.s32.totalorder %s1043_s16, %s1039_s15  ;;  %s1059_s20 = sphi %s1100_s20, %s18_s20   ;;  %s1055_s19 = sphi %s1098_s19, %s1376_s19   ;;  %s1051_s18 = sphi %s1096_s18, %s1375_s18   ;;  %s1047_s17 = sphi %s1094_s17, %s1374_s17   ;;  %s1043_s16 = sphi %s1092_s16, %s1373_s16   ;;  %s1039_s15 = sphi %s1090_s15, %s1372_s15  }
   0x8   : > { %p1120_p1 = scmp.eq.s32.totalorder %s759_s21, 0  ;;  %p761_p2 = scmp.ge.s32.totalorder %s1059_s20, 1 }
   0x9   : > { %p157_p3 = scmp.lt.s32.totalorder %s1059_s20, 3  ;;  %s1365_s1 = sld [smem:[#allocation8_spill]] }
   0xa   : > { %p1128_p4 = por %p1120_p1, %p50_p0  ;;  %s1061_s28 = smov [#allocation4]  }
   0xb   : > { %p1135_p5 = pnand %p761_p2, %p157_p3  ;;  %s170_s29 = sshll.u32 %s1061_s28, 4  ;;  %s171_s29 = int_to_ptr.vmem [resolvable:$true] %s170_s29 }
   0xc   : > { %s1062_s30 = smov 128   ;;  %s1063_s5 = smov 8  }
   0xd   : > { %p861_p6 = pneg %p1135_p5  ;;  %s30_s6 = sadd.s32 1, %s1055_s19 }
   0xe   : > { %p32_p8 = scmp.ge.s32.totalorder %s30_s6, 2  ;;  %p44_p9 = scmp.ne.s32.totalorder %s1047_s17, %s1043_s16 }
   0xf   : > { %s168_s26 = sshll.u32 %s1365_s1, 4  ;;  %p862_p7 = pnand %p861_p6, %p1120_p1  ;;  %s169_s26 = int_to_ptr.hbm [resolvable:$true] %s168_s26 }
  0x10   : > { %p45_p10 = scmp.eq.s32.totalorder %s1059_s20, 0  ;;  %s1378_s6 = smov (%p32_p8, %s30_s6), 0 }
  0x11   : > { %864 = dma.hbm_to_vmem [thread:$0]  (!%p862_p7), %s169_s26, 2048, %s171_s29, [#allocation5], %s1062_s30, %s1062_s30, %s1063_s5  }
  0x12   : > { %s37_s7 = sadd.s32 1, %s1047_s17  ;;  %p1150_p11 = por %p45_p10, %p44_p9 }
  0x13   : > { %s34_s9 = ssub.s32 %s1055_s19, %s1378_s6  ;;  %s196_s10 = sand.u32 1, %s1047_s17  }
  0x14   : > { %p35_p12 = scmp.eq.s32.totalorder %s34_s9, 0  ;;  %p870_p13 = scmp.lt.s32.totalorder %s1059_s20, 2 }
  0x15   : > { %s765_s11 = sshll.u32 %s196_s10, 6  ;;  %s807_s12 = sshll.u32 %s1055_s19, 6 }
  0x16   : > { %s1160_s13 = scalar_select %p35_p12, %s1047_s17, %s37_s7  }
  0x17   : > { %s205_s21 = scalar_lea.hbm %s1357_s0, %s807_s12  ;;  %s200_s25 = scalar_lea.vmem [#allocation2], %s765_s11 }
  0x18   : > { %s206_s24 = sshll.u32 %s205_s21, 4  ;;  %s208_s26 = sshll.u32 %s200_s25, 4  ;;  %s207_s24 = int_to_ptr.hbm [resolvable:$true] %s206_s24  ;;  %s209_s26 = int_to_ptr.vmem [resolvable:$true] %s208_s26 }
  0x19   : > { %p866_p0 = pnand %p870_p13, %p1150_p11  ;;  %s197_s28 = scalar_lea.sflag [#allocation3], %s196_s10 }
  0x1a   : > { %220 = sbr.rel (%p1135_p5) target bundleno = 662 (0x296), region = 36  ;;  %s222_s29 = sand.u32 (!%p1135_p5), 1, %s1043_s16  }
  0x1b   : > { %868 = dma.hbm_to_vmem [thread:$0]  (!%p866_p0), %s207_s24, 1024, %s209_s26, %s197_s28, %s1062_s30, %s1062_s30, %s1063_s5  }
  0x1c   : > { %s769_s7 = sshll.u32 (!%p1135_p5), %s222_s29, 6  ;;  %s223_s9 = scalar_lea.sflag (!%p1135_p5), [#allocation3], %s222_s29 }
  0x1d   : > { %s1170_s1 = scalar_lea.vmem (!%p1135_p5), [#allocation2], %s769_s7 }
  0x1f   : > { %1030 = dma.done.wait (%p1128_p4), %s223_s9, 1024  }
  0x20   : > { %1032 = vsyncadd (%p1128_p4), %s223_s9, 4294966272 }
  0x21   : > { %1034 = dma.done.wait (%p1120_p1), [#allocation5], 2048  }
  0x22   : > { %1036 = vsyncadd (%p1120_p1), [#allocation5], 4294965248  ;;  %v304_v0 = vld [vmem:[#allocation4 + $0x78] sm:$0xff]  ;;  %v303_v1 = vld [vmem:[#allocation4 + $0x70] sm:$0xff]  ;;  %v1064_v41 = vmov 128.0  }
  0x23   : > { %307 = vmatpush.msra.mxu0 %v304_v0  ;;  %v302_v2 = vld [vmem:[#allocation4 + $0x68] sm:$0xff]  ;;  %v301_v3 = vld [vmem:[#allocation4 + $0x60] sm:$0xff]  ;;  %v300_v4 = vld [vmem:[#allocation4 + $0x58] sm:$0xff]  ;;  %927 = vrcp.f32 %v1064_v41 }
  0x24   : > { %v299_v5 = vld [vmem:[#allocation4 + $0x50] sm:$0xff]  ;;  %v298_v6 = vld [vmem:[#allocation4 + $0x48] sm:$0xff]  ;;  %v297_v7 = vld [vmem:[#allocation4 + $0x40] sm:$0xff] }
  0x25   : > { %308 = vmatpush.msra.mxu0 %v303_v1  ;;  %v296_v8 = vld [vmem:[#allocation4 + $0x38] sm:$0xff]  ;;  %v295_v9 = vld [vmem:[#allocation4 + $0x30] sm:$0xff]  ;;  %v294_v10 = vld [vmem:[#allocation4 + $0x28] sm:$0xff] }
  0x26   : > { %v293_v11 = vld [vmem:[#allocation4 + $0x20] sm:$0xff]  ;;  %v292_v12 = vld [vmem:[#allocation4 + $0x18] sm:$0xff]  ;;  %v291_v13 = vld [vmem:[#allocation4 + $0x10] sm:$0xff] }
  0x27   : > { %309 = vmatpush.msra.mxu0 %v302_v2  ;;  %v290_v14 = vld [vmem:[#allocation4 + $0x8] sm:$0xff]  ;;  %v289_v15 = vld [vmem:[#allocation4] sm:$0xff]  ;;  %v283_v18 = vld [vmem:[%s1170_s1 + $0x10] sm:$0xff] }
  0x28   : > { %v281_v16 = vld [vmem:[%s1170_s1] sm:$0xff]  ;;  %v282_v17 = vld [vmem:[%s1170_s1 + $0x8] sm:$0xff]  ;;  %v284_v19 = vld [vmem:[%s1170_s1 + $0x18] sm:$0xff] }
  0x29   : > { %310 = vmatpush.msra.mxu0 %v301_v3  ;;  %v285_v20 = vld [vmem:[%s1170_s1 + $0x20] sm:$0xff]  ;;  %v286_v21 = vld [vmem:[%s1170_s1 + $0x28] sm:$0xff]  ;;  %v287_v22 = vld [vmem:[%s1170_s1 + $0x30] sm:$0xff]  ;;  %v928_v42 = vpop.eup %927 }
  0x2a   : > { %v288_v23 = vld [vmem:[%s1170_s1 + $0x38] sm:$0xff]  ;;  %v924_v26 = vld [vmem:[%s1359_s2] ss:$0 sm:$0xff]  ;;  %v367_v43 = vmul.f32 128.0, %v928_v42  ;;  %vm371_vm0 = vweird.f32 %v928_v42  ;;  %v814_v59 = vld [vmem:[%s1360_s3 + $0x30] sm:$0xff]  ;;  %s771_s1 = sshll.u32 %s1051_s18, 3 }
  0x2b   : > { %311 = vmatpush.msra.mxu0 %v300_v4  ;;  %v815_v52 = vld [vmem:[%s1360_s3 + $0x38] sm:$0xff]  ;;  %p273_p1 = scmp.lt.s32.totalorder %s771_s1, 15 }
  0x2c   : > { %v368_v44 = vsub.f32 1.0, %v367_v43  ;;  %839 = vmatpush.bf16.xpose.msra.mxu2 %v815_v52  ;;  %840 = vmatpush.bf16.xpose.msra.mxu3 %v815_v52 }
  0x2d   : > { %312 = vmatpush.msra.mxu0 %v299_v5  ;;  %603 = vmatpush.bf16.xpose.msra.mxu1 %v815_v52  ;;  %s1380_s1 = smov (!%p273_p1, %s771_s1), 15 }
  0x2e   : > { %v369_v45 = vmul.f32 %v928_v42, %v368_v44  ;;  %s772_s27 = sshll.u32 %s1380_s1, 2 }
  0x2f   : > { %313 = vmatpush.msra.mxu0 %v298_v6  ;;  %s279_s8 = scalar_lea.vmem %s1361_s4, %s772_s27 }
  0x30   : > { %v370_v46 = vadd.f32 %v928_v42, %v369_v45 }
  0x31   : > { %314 = vmatpush.msra.mxu0 %v297_v7 }
  0x32   : > { %v1194_v47 = vsel %vm371_vm0, %v928_v42, %v370_v46 }
  0x33   : > { %315 = vmatpush.msra.mxu0 %v296_v8 }
  0x34   : > { %841 = vmatpush.bf16.xpose.msra.mxu2 %v814_v59  ;;  %842 = vmatpush.bf16.xpose.msra.mxu3 %v814_v59 }
  0x35   : > { %316 = vmatpush.msra.mxu0 %v295_v9  ;;  %604 = vmatpush.bf16.xpose.msra.mxu1 %v814_v59 }
  0x37   : > { %317 = vmatpush.msra.mxu0 %v294_v10 }
  0x39   : > { %318 = vmatpush.msra.mxu0 %v293_v11 }
  0x3b   : > { %319 = vmatpush.msra.mxu0 %v292_v12 }
  0x3d   : > { %320 = vmatpush.msra.mxu0 %v291_v13 }
  0x3f   : > { %321 = vmatpush.msra.mxu0 %v290_v14 }
  0x41   : > { %322 = vmatpush.msra.mxu0 %v289_v15 }
  0x42   : > { %323 = vmatmul.f32.vlgmr.msra.gmra.mxu0 %v281_v16 }
  0x4a   : > { %326 = vmatmul.f32.gmra.mxu0 %v282_v17 }
  0x52   : > { %329 = vmatmul.f32.gmra.mxu0 %v283_v18  ;;  %v813_v18 = vld [vmem:[%s1360_s3 + $0x28] sm:$0xff] }
  0x53   : > { %843 = vmatpush.bf16.xpose.msra.mxu2 %v813_v18  ;;  %844 = vmatpush.bf16.xpose.msra.mxu3 %v813_v18 }
  0x54   : > { %605 = vmatpush.bf16.xpose.msra.mxu1 %v813_v18 }
  0x5a   : > { %332 = vmatmul.f32.gmra.mxu0 %v284_v19  ;;  %v812_v19 = vld [vmem:[%s1360_s3 + $0x20] sm:$0xff] }
  0x5b   : > { %845 = vmatpush.bf16.xpose.msra.mxu2 %v812_v19  ;;  %846 = vmatpush.bf16.xpose.msra.mxu3 %v812_v19 }
  0x5c   : > { %606 = vmatpush.bf16.xpose.msra.mxu1 %v812_v19 }
  0x62   : > { %335 = vmatmul.f32.gmra.mxu0 %v285_v20  ;;  %v811_v20 = vld [vmem:[%s1360_s3 + $0x18] sm:$0xff] }
  0x63   : > { %847 = vmatpush.bf16.xpose.msra.mxu2 %v811_v20  ;;  %848 = vmatpush.bf16.xpose.msra.mxu3 %v811_v20 }
  0x64   : > { %607 = vmatpush.bf16.xpose.msra.mxu1 %v811_v20 }
  0x6a   : > { %338 = vmatmul.f32.gmra.mxu0 %v286_v21  ;;  %v810_v21 = vld [vmem:[%s1360_s3 + $0x10] sm:$0xff] }
  0x6b   : > { %849 = vmatpush.bf16.xpose.msra.mxu2 %v810_v21  ;;  %850 = vmatpush.bf16.xpose.msra.mxu3 %v810_v21 }
  0x6c   : > { %608 = vmatpush.bf16.xpose.msra.mxu1 %v810_v21 }
  0x72   : > { %341 = vmatmul.f32.gmra.mxu0 %v287_v22 }
  0x7a   : > { %344 = vmatmul.f32.gmra.mxu0 %v288_v23 }
  0xbf   : > { %v324_v24 = vpop.f32.mrf.mxu0 }
  0xc0   : > { %v325_v37 = vadd.f32 %v924_v26, %v324_v24 }
  0xc7   : > { %v327_v25 = vpop.f32.mrf.mxu0 }
  0xc8   : > { %v1191_v32 = vadd.f32 %v924_v26, %v327_v25  ;;  %v809_v25 = vld [vmem:[%s1360_s3 + $0x8] sm:$0xff] }
  0xc9   : > { %851 = vmatpush.bf16.xpose.msra.mxu2 %v809_v25  ;;  %852 = vmatpush.bf16.xpose.msra.mxu3 %v809_v25 }
  0xca   : > { %609 = vmatpush.bf16.xpose.msra.mxu1 %v809_v25 }
  0xcf   : > { %v330_v27 = vpop.f32.mrf.mxu0 }
  0xd0   : > { %v331_v28 = vadd.f32 %v924_v26, %v330_v27 }
  0xd2   : > { %354 = vadd.xlane.f32.xlu1 %v331_v28 }
  0xd7   : > { %v333_v29 = vpop.f32.mrf.mxu0 }
  0xd8   : > { %v334_v30 = vadd.f32 %v924_v26, %v333_v29 }
  0xda   : > { %356 = vadd.xlane.f32.xlu1 %v334_v30 }
  0xdf   : > { %v336_v31 = vpop.f32.mrf.mxu0 }
  0xe0   : > { %v337_v33 = vadd.f32 %v924_v26, %v336_v31 }
  0xe2   : > { %358 = vadd.xlane.f32.xlu0 %v337_v33  ;;  %352 = vadd.xlane.f32.xlu1 %v1191_v32 }
  0xe7   : > { %v339_v34 = vpop.f32.mrf.mxu0 }
  0xe8   : > { %v340_v35 = vadd.f32 %v924_v26, %v339_v34 }
  0xea   : > { %360 = vadd.xlane.f32.xlu0 %v340_v35 }
  0xef   : > { %v342_v36 = vpop.f32.mrf.mxu0 }
  0xf0   : > { %v343_v38 = vadd.f32 %v924_v26, %v342_v36 }
  0xf2   : > { %362 = vadd.xlane.f32.xlu2 %v343_v38  ;;  %350 = vadd.xlane.f32.xlu0 %v325_v37 }
  0xf7   : > { %v345_v39 = vpop.f32.mrf.mxu0 }
  0xf8   : > { %v346_v40 = vadd.f32 %v924_v26, %v345_v39  ;;  %v808_v26 = vld [vmem:[%s1360_s3] sm:$0xff] }
  0xf9   : > { %853 = vmatpush.bf16.xpose.msra.mxu2 %v808_v26  ;;  %854 = vmatpush.bf16.xpose.msra.mxu3 %v808_v26 }
  0xfa   : > { %364 = vadd.xlane.f32.xlu2 %v346_v40  ;;  %610 = vmatpush.bf16.xpose.msra.mxu1 %v808_v26 }
 0x145   : > { %v355_v48 = vpop.xlane.xlu1 %354 }
 0x146   : > { %v375_v49 = vmul.f32 %v1194_v47, %v355_v48 }
 0x148   : > { %v1197_v50 = vsub.f32 %v331_v28, %v375_v49 }
 0x14a   : > { %v391_v51 = vmul.f32 %v1197_v50, %v1197_v50 }
 0x14c   : > { %401 = vadd.xlane.f32.xlu1 %v391_v51 }
 0x14d   : > { %v357_v55 = vpop.xlane.xlu1 %356 }
 0x14e   : > { %v376_v57 = vmul.f32 %v1194_v47, %v357_v55 }
 0x150   : > { %v1213_v61 = vsub.f32 %v334_v30, %v376_v57 }
 0x152   : > { %v392_v0 = vmul.f32 %v1213_v61, %v1213_v61 }
 0x155   : > { %v359_v53 = vpop.xlane.xlu0 %358  ;;  %v353_v6 = vpop.xlane.xlu1 %352 }
 0x156   : > { %v377_v54 = vmul.f32 %v1194_v47, %v359_v53  ;;  %v374_v9 = vmul.f32 %v1194_v47, %v353_v6 }
 0x158   : > { %v1205_v56 = vsub.f32 %v337_v33, %v377_v54  ;;  %v1234_v13 = vsub.f32 %v1191_v32, %v374_v9 }
 0x15a   : > { %v393_v58 = vmul.f32 %v1205_v56, %v1205_v56  ;;  %v390_v17 = vmul.f32 %v1234_v13, %v1234_v13 }
 0x15c   : > { %405 = vadd.xlane.f32.xlu2 %v393_v58 }
 0x15d   : > { %v361_v60 = vpop.xlane.xlu0 %360 }
 0x15e   : > { %v378_v62 = vmul.f32 %v1194_v47, %v361_v60 }
 0x160   : > { %v1216_v63 = vsub.f32 %v340_v35, %v378_v62 }
 0x162   : > { %v394_v1 = vmul.f32 %v1216_v63, %v1216_v63 }
 0x164   : > { %403 = vadd.xlane.f32.xlu2 %v392_v0  ;;  %407 = vadd.xlane.f32.xlu0 %v394_v1 }
 0x165   : > { %v363_v2 = vpop.xlane.xlu2 %362  ;;  %v351_v3 = vpop.xlane.xlu0 %350 }
 0x166   : > { %v379_v4 = vmul.f32 %v1194_v47, %v363_v2  ;;  %v373_v5 = vmul.f32 %v1194_v47, %v351_v3 }
 0x168   : > { %v1224_v7 = vsub.f32 %v343_v38, %v379_v4  ;;  %v1226_v8 = vsub.f32 %v325_v37, %v373_v5 }
 0x16a   : > { %v395_v10 = vmul.f32 %v1224_v7, %v1224_v7  ;;  %v389_v11 = vmul.f32 %v1226_v8, %v1226_v8 }
 0x16c   : > { %409 = vadd.xlane.f32.xlu0 %v395_v10  ;;  %397 = vadd.xlane.f32.xlu2 %v389_v11 }
 0x16d   : > { %v365_v12 = vpop.xlane.xlu2 %364 }
 0x16e   : > { %v380_v14 = vmul.f32 %v1194_v47, %v365_v12 }
 0x170   : > { %v1237_v15 = vsub.f32 %v346_v40, %v380_v14 }
 0x172   : > { %v396_v16 = vmul.f32 %v1237_v15, %v1237_v15 }
 0x174   : > { %411 = vadd.xlane.f32.xlu1 %v396_v16  ;;  %399 = vadd.xlane.f32.xlu0 %v390_v17  ;;  %v1291_v17 = vld [vmem:[%s1359_s2 + $0x1] ss:$0 sm:$0xff] }
 0x1bf   : > { %v402_v22 = vpop.xlane.xlu1 %401 }
 0x1c0   : > { %v415_v23 = vmul.f32 %v402_v22, %v1194_v47 }
 0x1c2   : > { %v423_v24 = vadd.f32 1e-05, %v415_v23 }
 0x1c4   : > { %929 = vrsqrt.f32 %v423_v24  ;;  %vm455_vm3 = vweird.f32 %v423_v24 }
 0x1ca   : > { %v930_v27 = vpop.eup %929 }
 0x1cb   : > { %v450_v30 = vmul.f32 %v930_v27, %v423_v24  ;;  %vm456_vm1 = vweird.f32 %v930_v27 }
 0x1cc   : > { %vm1272_vm4 = vmor %vm455_vm3, %vm456_vm1 }
 0x1cd   : > { %v451_v32 = vmul.f32 %v930_v27, %v450_v30 }
 0x1cf   : > { %v406_v28 = vpop.xlane.xlu2 %405  ;;  %v452_v38 = vmul.f32 0.5, %v451_v32 }
 0x1d0   : > { %v417_v29 = vmul.f32 %v406_v28, %v1194_v47 }
 0x1d1   : > { %v453_v43 = vsub.f32 1.5, %v452_v38 }
 0x1d2   : > { %v425_v31 = vadd.f32 1e-05, %v417_v29  ;;  %v926_v29 = vld [vmem:[%s1359_s2 + $0x2] ss:$0 sm:$0xff] }
 0x1d3   : > { %v454_v53 = vmul.f32 %v930_v27, %v453_v43 }
 0x1d4   : > { %931 = vrsqrt.f32 %v425_v31  ;;  %vm475_vm5 = vweird.f32 %v425_v31 }
 0x1d5   : > { %v458_v3 = vsel %vm1272_vm4, %v930_v27, %v454_v53 }
 0x1d6   : > { %v511_v16 = vmul.f32 %v458_v3, %v1197_v50 }
 0x1d7   : > { %v404_v33 = vpop.xlane.xlu2 %403  ;;  %v408_v34 = vpop.xlane.xlu0 %407 }
 0x1d8   : > { %v416_v35 = vmul.f32 %v404_v33, %v1194_v47  ;;  %v418_v36 = vmul.f32 %v408_v34, %v1194_v47 }
 0x1da   : > { %v932_v37 = vpop.eup %931  ;;  %v424_v39 = vadd.f32 1e-05, %v416_v35  ;;  %v426_v40 = vadd.f32 1e-05, %v418_v36 }
 0x1db   : > { %v470_v41 = vmul.f32 %v932_v37, %v425_v31  ;;  %vm476_vm2 = vweird.f32 %v932_v37 }
 0x1dc   : > { %933 = vrsqrt.f32 %v424_v39  ;;  %vm1277_vm6 = vmor %vm475_vm5, %vm476_vm2  ;;  %vm465_vm9 = vweird.f32 %v424_v39  ;;  %vm485_vm11 = vweird.f32 %v426_v40 }
 0x1dd   : > { %v471_v42 = vmul.f32 %v932_v37, %v470_v41  ;;  %935 = vrsqrt.f32 %v426_v40 }
 0x1df   : > { %v472_v44 = vmul.f32 0.5, %v471_v42  ;;  %v398_v45 = vpop.xlane.xlu2 %397  ;;  %v410_v46 = vpop.xlane.xlu0 %409 }
 0x1e0   : > { %v413_v48 = vmul.f32 %v398_v45, %v1194_v47  ;;  %v419_v49 = vmul.f32 %v410_v46, %v1194_v47 }
 0x1e1   : > { %v473_v51 = vsub.f32 1.5, %v472_v44 }
 0x1e2   : > { %v934_v52 = vpop.eup %933  ;;  %v1267_v54 = vadd.f32 1e-05, %v413_v48  ;;  %v1269_v55 = vadd.f32 1e-05, %v419_v49 }
 0x1e3   : > { %v936_v57 = vpop.eup %935  ;;  %v474_v58 = vmul.f32 %v932_v37, %v473_v51  ;;  %v460_v59 = vmul.f32 %v934_v52, %v424_v39  ;;  %vm466_vm7 = vweird.f32 %v934_v52 }
 0x1e4   : > { %v480_v60 = vmul.f32 %v936_v57, %v426_v40  ;;  %937 = vrsqrt.f32 %v1267_v54  ;;  %vm486_vm8 = vweird.f32 %v936_v57  ;;  %vm467_vm10 = vmor %vm465_vm9, %vm466_vm7  ;;  %vm495_vm15 = vweird.f32 %v1269_v55 }
 0x1e5   : > { %v461_v0 = vmul.f32 %v934_v52, %v460_v59  ;;  %939 = vrsqrt.f32 %v1269_v55  ;;  %v478_v9 = vsel %vm1277_vm6, %v932_v37, %v474_v58  ;;  %vm487_vm12 = vmor %vm485_vm11, %vm486_vm8  ;;  %vm435_vm0 = vweird.f32 %v1267_v54 }
 0x1e6   : > { %v481_v2 = vmul.f32 %v936_v57, %v480_v60  ;;  %v513_v22 = vmul.f32 %v478_v9, %v1205_v56  ;;  %v520_v56 = vmul.f32 %v1291_v17, %v511_v16 }
 0x1e7   : > { %v462_v4 = vmul.f32 0.5, %v461_v0  ;;  %v412_v5 = vpop.xlane.xlu1 %411  ;;  %v400_v6 = vpop.xlane.xlu0 %399 }
 0x1e8   : > { %v482_v10 = vmul.f32 0.5, %v481_v2  ;;  %v420_v11 = vmul.f32 %v412_v5, %v1194_v47  ;;  %v414_v12 = vmul.f32 %v400_v6, %v1194_v47  ;;  %v522_v31 = vmul.f32 %v1291_v17, %v513_v22 }
 0x1e9   : > { %v463_v14 = vsub.f32 1.5, %v462_v4  ;;  %v529_v41 = vadd.f32 %v926_v29, %v520_v56 }
 0x1ea   : > { %v1293_v18 = vpop.eup %937  ;;  %v483_v19 = vsub.f32 1.5, %v482_v10  ;;  %v1295_v20 = vadd.f32 1e-05, %v420_v11  ;;  %v1297_v21 = vadd.f32 1e-05, %v414_v12  ;;  %v531_v42 = vadd.f32 %v926_v29, %v522_v31 }
 0x1eb   : > { %v940_v47 = vpop.eup %939  ;;  %v464_v23 = vmul.f32 %v934_v52, %v463_v14  ;;  %v430_v50 = vmul.f32 %v1293_v18, %v1267_v54  ;;  %vm436_vm13 = vweird.f32 %v1293_v18 }
 0x1ec   : > { %v484_v24 = vmul.f32 %v936_v57, %v483_v19  ;;  %v490_v25 = vmul.f32 %v940_v47, %v1269_v55  ;;  %941 = vrsqrt.f32 %v1295_v20  ;;  %vm496_vm14 = vweird.f32 %v940_v47  ;;  %vm437_vm2 = vmor %vm435_vm0, %vm436_vm13 }
 0x1ed   : > { %v431_v26 = vmul.f32 %v1293_v18, %v430_v50  ;;  %943 = vrsqrt.f32 %v1297_v21  ;;  %v468_v28 = vsel %vm467_vm10, %v934_v52, %v464_v23  ;;  %vm497_vm1 = vmor %vm495_vm15, %vm496_vm14  ;;  %vm505_vm5 = vweird.f32 %v1295_v20 }
 0x1ee   : > { %v491_v27 = vmul.f32 %v940_v47, %v490_v25  ;;  %v488_v30 = vsel %vm487_vm12, %v936_v57, %v484_v24  ;;  %v512_v33 = vmul.f32 %v468_v28, %v1213_v61  ;;  %vm445_vm7 = vweird.f32 %v1297_v21 }
 0x1ef   : > { %v432_v32 = vmul.f32 0.5, %v431_v26  ;;  %v514_v34 = vmul.f32 %v488_v30, %v1216_v63 }
 0x1f0   : > { %v492_v35 = vmul.f32 0.5, %v491_v27  ;;  %v521_v37 = vmul.f32 %v1291_v17, %v512_v33 }
 0x1f1   : > { %v433_v36 = vsub.f32 1.5, %v432_v32  ;;  %v523_v38 = vmul.f32 %v1291_v17, %v514_v34 }
 0x1f2   : > { %v942_v39 = vpop.eup %941  ;;  %v493_v40 = vsub.f32 1.5, %v492_v35  ;;  %v530_v45 = vadd.f32 %v926_v29, %v521_v37 }
 0x1f3   : > { %v944_v43 = vpop.eup %943  ;;  %v500_v44 = vmul.f32 %v942_v39, %v1295_v20  ;;  %v434_v61 = vmul.f32 %v1293_v18, %v433_v36  ;;  %v532_v48 = vadd.f32 %v926_v29, %v523_v38  ;;  %vm506_vm3 = vweird.f32 %v942_v39 }
 0x1f4   : > { %v494_v63 = vmul.f32 %v940_v47, %v493_v40  ;;  %v440_v46 = vmul.f32 %v944_v43, %v1297_v21  ;;  %v536_v51 = vpack.c.bf16 %v530_v45, %v529_v41  ;;  %vm446_vm4 = vweird.f32 %v944_v43  ;;  %vm507_vm6 = vmor %vm505_vm5, %vm506_vm3 }
 0x1f5   : > { %v501_v49 = vmul.f32 %v942_v39, %v500_v44  ;;  %v537_v53 = vpack.c.bf16 %v532_v48, %v531_v42  ;;  %v438_v60 = vsel %vm437_vm2, %v1293_v18, %v434_v61  ;;  %vm447_vm8 = vmor %vm445_vm7, %vm446_vm4 }
 0x1f6   : > { %v441_v52 = vmul.f32 %v944_v43, %v440_v46  ;;  %616 = vmatmul.bf16.vlgmr.msra.gmra.mxu2 %v536_v51  ;;  %v498_v58 = vsel %vm497_vm1, %v940_v47, %v494_v63  ;;  %v509_v1 = vmul.f32 %v438_v60, %v1226_v8 }
 0x1f7   : > { %v502_v57 = vmul.f32 0.5, %v501_v49  ;;  %621 = vmatmul.bf16.vlgmr.msra.gmra.mxu3 %v537_v53  ;;  %v515_v0 = vmul.f32 %v498_v58, %v1224_v7 }
 0x1f8   : > { %v442_v59 = vmul.f32 0.5, %v441_v52  ;;  %v518_v7 = vmul.f32 %v1291_v17, %v509_v1 }
 0x1f9   : > { %v503_v62 = vsub.f32 1.5, %v502_v57  ;;  %v524_v6 = vmul.f32 %v1291_v17, %v515_v0 }
 0x1fa   : > { %v443_v55 = vsub.f32 1.5, %v442_v59  ;;  %v527_v14 = vadd.f32 %v926_v29, %v518_v7 }
 0x1fb   : > { %v504_v54 = vmul.f32 %v942_v39, %v503_v62  ;;  %v533_v11 = vadd.f32 %v926_v29, %v524_v6 }
 0x1fc   : > { %v444_v2 = vmul.f32 %v944_v43, %v443_v55 }
 0x1fd   : > { %v508_v3 = vsel %vm507_vm6, %v942_v39, %v504_v54 }
 0x1fe   : > { %v448_v4 = vsel %vm447_vm8, %v944_v43, %v444_v2  ;;  %v516_v5 = vmul.f32 %v508_v3, %v1237_v15 }
 0x1ff   : > { %v510_v9 = vmul.f32 %v448_v4, %v1234_v13 }
 0x200   : > { %v525_v10 = vmul.f32 %v1291_v17, %v516_v5 }
 0x201   : > { %v519_v8 = vmul.f32 %v1291_v17, %v510_v9 }
 0x202   : > { %v534_v12 = vadd.f32 %v926_v29, %v525_v10 }
 0x203   : > { %v528_v16 = vadd.f32 %v926_v29, %v519_v8 }
 0x204   : > { %v538_v18 = vpack.c.bf16 %v534_v12, %v533_v11 }
 0x205   : > { %v535_v19 = vpack.c.bf16 %v528_v16, %v527_v14 }
 0x207   : > { %611 = vmatmul.bf16.vlgmr.msra.gmra.mxu1 %v535_v19  ;;  %626 = vmatmul.bf16.gmra.mxu3 %v538_v18 }
 0x279   : > { %v617_v15 = vpop.f32.mrf.mxu2 }
 0x27a   : > { %v622_v20 = vpop.f32.mrf.mxu3 }
 0x281   : > { %v619_v13 = vpop.f32.mrf.mxu2 }
 0x282   : > { %v824_v17 = vpack.c.bf16 %v619_v13, %v617_v15  ;;  %v624_v21 = vpop.f32.mrf.mxu3 }
 0x283   : > { %v829_v22 = vpack.c.bf16 %v624_v21, %v622_v20 }
 0x284   : > { %v612_v47 = vpop.f32.mrf.mxu1  ;;  %836 = vst [vmem:[%s279_s8 + $0x8] sm:$0xff] %v824_v17  }
 0x285   : > { %837 = vst [vmem:[%s279_s8 + $0x10] sm:$0xff] %v829_v22  }
 0x28a   : > { %v627_v23 = vpop.f32.mrf.mxu3 }
 0x28c   : > { %v614_v50 = vpop.f32.mrf.mxu1 }
 0x28d   : > { %v819_v24 = vpack.c.bf16 %v614_v50, %v612_v47 }
 0x28f   : > { %820 = vst [vmem:[%s279_s8] sm:$0xff] %v819_v24  }
 0x292   : > { %v629_v25 = vpop.f32.mrf.mxu3 }
 0x293   : > { %v834_v26 = vpack.c.bf16 %v629_v25, %v627_v23 }
 0x295   : > { %838 = vst [vmem:[%s279_s8 + $0x18] sm:$0xff] %v834_v26  }
 0x296 PF: > { %s18_s20 = sadd.s32 1, %s1059_s20   ;;  %s1372_s15 = smov %s1043_s16 }
 0x297   : > { %p15_p2 = scmp.ge.s32.totalorder %s18_s20, 4   ;;  %s1373_s16 = smov %s1047_s17 }
 0x298   : > { %s1374_s17 = smov %s1160_s13  ;;  %s1375_s18 = smov %s1055_s19 }
 0x299   : > { %s1376_s19 = smov %s1378_s6  ;;  %17 = sbr.rel (!%p15_p2) target bundleno = 7 (0x7), region = 83 }
 0x29e   :  { %676 = vsyncpa [#allocation3], 1 }
 0x29f   :  { %678 = vsyncpa [#allocation3 + $0x1], 1 }
 0x2a0   :  { %679 = vsyncpa [#allocation5], 1 }

</bundles_post_ra>
